<compile_context>
chip_gen: v6e
topology: v6e:2x2x1
jax: 0.10.0
libtpu: 0.0.40
codegen_flags: <defaults>
</compile_context>

<pallas_src>
import numpy as np
import jax
import jax.numpy as jnp
from jax.experimental import pallas as pl
from jax.experimental.pallas import tpu as pltpu

# ------------------------- small, module-consistent config -------------------------
B = 2            # batch
L = 512          # audio samples
NFFT = 64        # (module default 512, scaled down)
HOP = 16         # (module default 64, scaled down)
FREQ_BINS = NFFT // 2 + 1            # 33 (nnAudio default freq_bins = n_fft//2 + 1)
T_FRAMES = L // HOP + 1              # 33 (center=True, reflect pad)
IMAGE = 64                           # (module default 224, scaled down)
N_STRIPS = NFFT // HOP               # 4 overlapping HOP-wide strips per frame
C_PAD = 2 * IMAGE                    # 128: lane-dense padded logits width

# PCEN parameters (trainable in torch; exp(log(v)) == v at init, so bake the values)
PCEN_EPS = 1e-6
PCEN_S = 0.025
PCEN_ALPHA = 0.6
PCEN_DELTA = 0.1
PCEN_R = 0.2


# ========================= fused Pallas kernel (grid = (B,)) ========================
def fused_kernel(audio_ref, wcat_ref, psum_ref, lt_ref, wr_ref, wct_ref,
                 wcls_ref, bcls_ref, pred_ref, spec_ref):
    # ---- framing + STFT: frame t = audio rows t..t+3 of the (T+3, HOP) view; the
    #      framed matmul against [wcos | wsin] is done strip-by-strip (4 MXU pushes).
    reim = jnp.dot(audio_ref[0, 0:T_FRAMES, :], wcat_ref[0],
                   preferred_element_type=jnp.float32)                     # (T, 2F)
    for k in range(1, N_STRIPS):
        reim = reim + jnp.dot(audio_ref[0, k:k + T_FRAMES, :], wcat_ref[k],
                              preferred_element_type=jnp.float32)

    # ---- magnitude: re^2 + im^2 via a 0/1 pair-sum matmul (avoids lane slicing) ----
    power = reim * reim
    mag2 = jnp.dot(power, psum_ref[...], preferred_element_type=jnp.float32)  # (T, F)
    mag = jnp.sqrt(mag2 + 1e-8)        # nnAudio trainable STFT adds 1e-8 inside sqrt

    # ---- PCEN: the torch split(1,-2) recurrence over freq == lower-tri matmul ----
    m = jnp.dot(mag, lt_ref[...], preferred_element_type=jnp.float32)      # (T, F)
    den = jnp.exp(PCEN_ALPHA * jnp.log(m + PCEN_EPS))                      # (M+eps)^a
    base = mag * pl.reciprocal(den, approx=True) + PCEN_DELTA
    pc = jnp.exp(PCEN_R * jnp.log(base)) - PCEN_DELTA ** PCEN_R            # (.)^r - d^r

    # ---- framewise min-max normalization (over freq, per time frame), NaN -> 0 ----
    mx = jnp.max(pc, axis=-1, keepdims=True)
    mn = jnp.min(pc, axis=-1, keepdims=True)
    nrm = (pc - mn) * pl.reciprocal(mx - mn, approx=True)
    nrm = jnp.where(jnp.isnan(nrm), 0.0, nrm)                              # (T, F)

    # ---- torchvision Resize((IMAGE, IMAGE)) as two matmuls: Wr @ spec_ft @ Wct ----
    tmp = jnp.dot(wr_ref[...], nrm.T, preferred_element_type=jnp.float32)  # (H, T)
    img = jnp.dot(tmp, wct_ref[...], preferred_element_type=jnp.float32)   # (H, W)
    spec_ref[0] = img

    # TODO(synk): the timm backbone (arbitrary `model_name`) has no faithful Pallas
    # translation; a deterministic avgmax-pool + linear stand-in produces the logits
    # (real logits live in lanes 0:2 of the 128-wide padded output).
    avg_f = jnp.mean(img, axis=0, keepdims=True)                           # (1, W)
    max_f = jnp.max(img, axis=0, keepdims=True)                            # (1, W)
    logits = (jnp.dot(avg_f, wcls_ref[0], preferred_element_type=jnp.float32)
              + jnp.dot(max_f, wcls_ref[1], preferred_element_type=jnp.float32)
              + bcls_ref[...])                                             # (1, C_PAD)
    pred_ref[0] = logits


def fused_forward(audio2d, params):
    b, rows, hop = audio2d.shape

    def const(shape):
        return pl.BlockSpec(shape, lambda i: (0,) * len(shape))

    return pl.pallas_call(
        fused_kernel,
        out_shape=(jax.ShapeDtypeStruct((b, 1, C_PAD), jnp.float32),
                   jax.ShapeDtypeStruct((b, IMAGE, IMAGE), jnp.float32)),
        grid=(b,),
        in_specs=[pl.BlockSpec((1, rows, hop), lambda i: (i, 0, 0)),        # audio
                  const((N_STRIPS, HOP, 2 * FREQ_BINS)),                    # [cos|sin]
                  const((2 * FREQ_BINS, FREQ_BINS)),                        # pair-sum
                  const((FREQ_BINS, FREQ_BINS)),                            # PCEN L^T
                  const((IMAGE, FREQ_BINS)),                                # row resize
                  const((T_FRAMES, IMAGE)),                                 # col resize
                  const((2, IMAGE, C_PAD)),                                 # head W
                  const((1, C_PAD))],                                       # head b
        out_specs=(pl.BlockSpec((1, 1, C_PAD), lambda i: (i, 0, 0)),
                   pl.BlockSpec((1, IMAGE, IMAGE), lambda i: (i, 0, 0))),
        compiler_params=pltpu.CompilerParams(dimension_semantics=("parallel",)),
    )(audio2d, params["wcat"], params["psum"], params["lt"], params["wr"],
      params["wct"], params["w_cls"], params["b_cls"])


# ================================ host-side constants ===============================
def make_fourier_kernels(n_fft, freq_bins, hop):
    """nnAudio create_fourier_kernels (freq_scale='no', periodic hann) as strip-split
    [wcos | wsin] weights of shape (n_fft//hop, hop, 2*freq_bins)."""
    n = np.arange(n_fft, dtype=np.float64)
    window = 0.5 - 0.5 * np.cos(2.0 * np.pi * n / n_fft)       # periodic hann
    k = np.arange(freq_bins, dtype=np.float64)[:, None]
    arg = 2.0 * np.pi * k * n[None, :] / n_fft
    wcos = np.cos(arg) * window[None, :]                       # (F, NFFT)
    wsin = np.sin(arg) * window[None, :]
    wcat = np.concatenate([wcos.T, wsin.T], axis=1)            # (NFFT, 2F)
    return jnp.asarray(wcat.reshape(n_fft // hop, hop, 2 * freq_bins).astype(np.float32))


def pair_sum_matrix(freq_bins):
    """S with S[f,f]=S[F+f,f]=1 so that [re|im]^2 @ S = re^2 + im^2."""
    eye = np.eye(freq_bins, dtype=np.float32)
    return jnp.asarray(np.concatenate([eye, eye], axis=0))     # (2F, F)


def pcen_smoother(freq_bins, s):
    """L[f,k] = s*(1-s)^(f-k), k<=f  ==  the torch pcen recurrence along freq.
    Returned transposed so the kernel's (T,F)-layout matmul is  M_tf = x_tf @ L^T."""
    idx = np.arange(freq_bins)
    d = idx[:, None] - idx[None, :]
    low = np.where(d >= 0, s * (1.0 - s) ** np.maximum(d, 0), 0.0)
    return jnp.asarray(low.T.astype(np.float32))               # (F, F)


def bilinear_matrix(out_size, in_size):
    """Interpolation matrix for bilinear resize, align_corners=False (torch)."""
    scale = in_size / out_size
    i = np.arange(out_size, dtype=np.float64)
    coord = np.clip((i + 0.5) * scale - 0.5, 0.0, in_size - 1)
    lo = np.floor(coord).astype(np.int64)
    hi = np.minimum(lo + 1, in_size - 1)
    w_hi = coord - lo
    mat = np.zeros((out_size, in_size), np.float32)
    mat[np.arange(out_size), lo] += (1.0 - w_hi).astype(np.float32)
    mat[np.arange(out_size), hi] += w_hi.astype(np.float32)
    return jnp.asarray(mat)


# ==================================== forward =======================================
def model_forward(x, params):
    b = x.shape[0]
    pad = NFFT // 2
    xp = jnp.pad(x, ((0, 0), (pad, pad)), mode="reflect")       # (B, L+NFFT) glue
    audio2d = xp.reshape(b, (L + NFFT) // HOP, HOP).astype(jnp.float32)
    pred_pad, spec = fused_forward(audio2d, params)
    return {"prediction": pred_pad[:, 0, :2], "spectrogram": spec}


model_forward = jax.jit(model_forward)


# ===================================== main =========================================
if __name__ == "__main__":
    key = jax.random.PRNGKey(0)
    kx, kw = jax.random.split(key)

    # deterministic inputs / parameters
    x = jax.random.normal(kx, (B, L), dtype=jnp.float32)

    params = {
        "wcat": make_fourier_kernels(NFFT, FREQ_BINS, HOP),     # (4, HOP, 2F)
        "psum": pair_sum_matrix(FREQ_BINS),                     # (2F, F)
        "lt": pcen_smoother(FREQ_BINS, PCEN_S),                 # (F, F)
        "wr": bilinear_matrix(IMAGE, FREQ_BINS),                # (IMAGE, F)
        "wct": bilinear_matrix(IMAGE, T_FRAMES).T,              # (T, IMAGE)
        "w_cls": 0.02 * jax.random.normal(kw, (2, IMAGE, C_PAD), dtype=jnp.float32),
        "b_cls": jnp.zeros((1, C_PAD), dtype=jnp.float32),
    }

    out = model_forward(x, params)
    jax.block_until_ready(out["prediction"])
    jax.block_until_ready(out["spectrogram"])

    assert out["prediction"].shape == (B, 2)
    assert out["spectrogram"].shape == (B, IMAGE, IMAGE)
    print("KERNEL_OK")
</pallas_src>

<mosaic_0001>
module attributes {stable_mosaic.version = 11 : i64} {
  func.func @fused_kernel(%arg0: i32, %arg1: memref<1x36x16xf32, #tpu.memory_space<vmem>>, %arg2: memref<4x16x66xf32, #tpu.memory_space<vmem>>, %arg3: memref<66x33xf32, #tpu.memory_space<vmem>>, %arg4: memref<33x33xf32, #tpu.memory_space<vmem>>, %arg5: memref<64x33xf32, #tpu.memory_space<vmem>>, %arg6: memref<33x64xf32, #tpu.memory_space<vmem>>, %arg7: memref<2x64x128xf32, #tpu.memory_space<vmem>>, %arg8: memref<1x128xf32, #tpu.memory_space<vmem>>, %arg9: memref<1x1x128xf32, #tpu.memory_space<vmem>>, %arg10: memref<1x64x64xf32, #tpu.memory_space<vmem>>) attributes {dimension_semantics = [#tpu.dimension_semantics<parallel>], iteration_bounds = array<i64: 2>, scalar_prefetch = 0 : i64, scratch_operands = 0 : i64, tpu.core_type = #tpu.core_type<tc>, window_params = [{transform_indices = @transform_0, window_bounds = array<i64: 1, 36, 16>}, {pipeline_mode = #tpu.pipeline_mode<synchronous>, transform_indices = @transform_1, window_bounds = array<i64: 4, 16, 66>}, {pipeline_mode = #tpu.pipeline_mode<synchronous>, transform_indices = @transform_2, window_bounds = array<i64: 66, 33>}, {pipeline_mode = #tpu.pipeline_mode<synchronous>, transform_indices = @transform_3, window_bounds = array<i64: 33, 33>}, {pipeline_mode = #tpu.pipeline_mode<synchronous>, transform_indices = @transform_4, window_bounds = array<i64: 64, 33>}, {pipeline_mode = #tpu.pipeline_mode<synchronous>, transform_indices = @transform_5, window_bounds = array<i64: 33, 64>}, {pipeline_mode = #tpu.pipeline_mode<synchronous>, transform_indices = @transform_6, window_bounds = array<i64: 2, 64, 128>}, {pipeline_mode = #tpu.pipeline_mode<synchronous>, transform_indices = @transform_7, window_bounds = array<i64: 1, 128>}, {transform_indices = @transform_8, window_bounds = array<i64: 1, 1, 128>}, {transform_indices = @transform_9, window_bounds = array<i64: 1, 64, 64>}]} {
    %c0 = arith.constant 0 : index
    %c0_0 = arith.constant 0 : index
    %c0_1 = arith.constant 0 : index
    %0 = vector.load %arg1[%c0, %c0_0, %c0_1] : memref<1x36x16xf32, #tpu.memory_space<vmem>>, vector<1x33x16xf32>
    %1 = vector.shape_cast %0 : vector<1x33x16xf32> to vector<33x16xf32>
    %c0_2 = arith.constant 0 : index
    %c0_3 = arith.constant 0 : index
    %c0_4 = arith.constant 0 : index
    %2 = vector.load %arg2[%c0_2, %c0_3, %c0_4] : memref<4x16x66xf32, #tpu.memory_space<vmem>>, vector<1x16x66xf32>
    %3 = vector.shape_cast %2 : vector<1x16x66xf32> to vector<16x66xf32>
    %cst = arith.constant dense<0.000000e+00> : vector<33x66xf32>
    %4 = tpu.matmul %1, %3, %cst {dimension_numbers = #tpu.dot_dimension_numbers<[1], [0], [0], [1], [0, 0, 1, 1], [], []>} : vector<33x16xf32>, vector<16x66xf32>, vector<33x66xf32> -> vector<33x66xf32>
    %c0_5 = arith.constant 0 : index
    %c1 = arith.constant 1 : index
    %c0_6 = arith.constant 0 : index
    %5 = vector.load %arg1[%c0_5, %c1, %c0_6] : memref<1x36x16xf32, #tpu.memory_space<vmem>>, vector<1x33x16xf32>
    %6 = vector.shape_cast %5 : vector<1x33x16xf32> to vector<33x16xf32>
    %c1_7 = arith.constant 1 : index
    %c0_8 = arith.constant 0 : index
    %c0_9 = arith.constant 0 : index
    %7 = vector.load %arg2[%c1_7, %c0_8, %c0_9] : memref<4x16x66xf32, #tpu.memory_space<vmem>>, vector<1x16x66xf32>
    %8 = vector.shape_cast %7 : vector<1x16x66xf32> to vector<16x66xf32>
    %cst_10 = arith.constant dense<0.000000e+00> : vector<33x66xf32>
    %9 = tpu.matmul %6, %8, %cst_10 {dimension_numbers = #tpu.dot_dimension_numbers<[1], [0], [0], [1], [0, 0, 1, 1], [], []>} : vector<33x16xf32>, vector<16x66xf32>, vector<33x66xf32> -> vector<33x66xf32>
    %10 = arith.addf %4, %9 : vector<33x66xf32>
    %c0_11 = arith.constant 0 : index
    %c2 = arith.constant 2 : index
    %c0_12 = arith.constant 0 : index
    %11 = vector.load %arg1[%c0_11, %c2, %c0_12] : memref<1x36x16xf32, #tpu.memory_space<vmem>>, vector<1x33x16xf32>
    %12 = vector.shape_cast %11 : vector<1x33x16xf32> to vector<33x16xf32>
    %c2_13 = arith.constant 2 : index
    %c0_14 = arith.constant 0 : index
    %c0_15 = arith.constant 0 : index
    %13 = vector.load %arg2[%c2_13, %c0_14, %c0_15] : memref<4x16x66xf32, #tpu.memory_space<vmem>>, vector<1x16x66xf32>
    %14 = vector.shape_cast %13 : vector<1x16x66xf32> to vector<16x66xf32>
    %cst_16 = arith.constant dense<0.000000e+00> : vector<33x66xf32>
    %15 = tpu.matmul %12, %14, %cst_16 {dimension_numbers = #tpu.dot_dimension_numbers<[1], [0], [0], [1], [0, 0, 1, 1], [], []>} : vector<33x16xf32>, vector<16x66xf32>, vector<33x66xf32> -> vector<33x66xf32>
    %16 = arith.addf %10, %15 : vector<33x66xf32>
    %c0_17 = arith.constant 0 : index
    %c3 = arith.constant 3 : index
    %c0_18 = arith.constant 0 : index
    %17 = vector.load %arg1[%c0_17, %c3, %c0_18] : memref<1x36x16xf32, #tpu.memory_space<vmem>>, vector<1x33x16xf32>
    %18 = vector.shape_cast %17 : vector<1x33x16xf32> to vector<33x16xf32>
    %c3_19 = arith.constant 3 : index
    %c0_20 = arith.constant 0 : index
    %c0_21 = arith.constant 0 : index
    %19 = vector.load %arg2[%c3_19, %c0_20, %c0_21] : memref<4x16x66xf32, #tpu.memory_space<vmem>>, vector<1x16x66xf32>
    %20 = vector.shape_cast %19 : vector<1x16x66xf32> to vector<16x66xf32>
    %cst_22 = arith.constant dense<0.000000e+00> : vector<33x66xf32>
    %21 = tpu.matmul %18, %20, %cst_22 {dimension_numbers = #tpu.dot_dimension_numbers<[1], [0], [0], [1], [0, 0, 1, 1], [], []>} : vector<33x16xf32>, vector<16x66xf32>, vector<33x66xf32> -> vector<33x66xf32>
    %22 = arith.addf %16, %21 : vector<33x66xf32>
    %23 = arith.mulf %22, %22 : vector<33x66xf32>
    %c0_23 = arith.constant 0 : index
    %c0_24 = arith.constant 0 : index
    %24 = vector.load %arg3[%c0_23, %c0_24] : memref<66x33xf32, #tpu.memory_space<vmem>>, vector<66x33xf32>
    %cst_25 = arith.constant dense<0.000000e+00> : vector<33x33xf32>
    %25 = tpu.matmul %23, %24, %cst_25 {dimension_numbers = #tpu.dot_dimension_numbers<[1], [0], [0], [1], [0, 0, 1, 1], [], []>} : vector<33x66xf32>, vector<66x33xf32>, vector<33x33xf32> -> vector<33x33xf32>
    %cst_26 = arith.constant 9.99999993E-9 : f32
    %26 = vector.broadcast %cst_26 : f32 to vector<33x33xf32>
    %27 = arith.addf %25, %26 : vector<33x33xf32>
    %28 = math.sqrt %27 : vector<33x33xf32>
    %c0_27 = arith.constant 0 : index
    %c0_28 = arith.constant 0 : index
    %29 = vector.load %arg4[%c0_27, %c0_28] : memref<33x33xf32, #tpu.memory_space<vmem>>, vector<33x33xf32>
    %cst_29 = arith.constant dense<0.000000e+00> : vector<33x33xf32>
    %30 = tpu.matmul %28, %29, %cst_29 {dimension_numbers = #tpu.dot_dimension_numbers<[1], [0], [0], [1], [0, 0, 1, 1], [], []>} : vector<33x33xf32>, vector<33x33xf32>, vector<33x33xf32> -> vector<33x33xf32>
    %cst_30 = arith.constant 9.99999997E-7 : f32
    %31 = vector.broadcast %cst_30 : f32 to vector<33x33xf32>
    %32 = arith.addf %30, %31 : vector<33x33xf32>
    %33 = math.log %32 : vector<33x33xf32>
    %cst_31 = arith.constant 6.000000e-01 : f32
    %34 = vector.broadcast %cst_31 : f32 to vector<33x33xf32>
    %35 = arith.mulf %34, %33 : vector<33x33xf32>
    %36 = math.exp %35 : vector<33x33xf32>
    %37 = tpu.reciprocal %36 {approx = true} : vector<33x33xf32> -> vector<33x33xf32>
    %38 = arith.mulf %28, %37 : vector<33x33xf32>
    %cst_32 = arith.constant 1.000000e-01 : f32
    %39 = vector.broadcast %cst_32 : f32 to vector<33x33xf32>
    %40 = arith.addf %38, %39 : vector<33x33xf32>
    %41 = math.log %40 : vector<33x33xf32>
    %cst_33 = arith.constant 2.000000e-01 : f32
    %42 = vector.broadcast %cst_33 : f32 to vector<33x33xf32>
    %43 = arith.mulf %42, %41 : vector<33x33xf32>
    %44 = math.exp %43 : vector<33x33xf32>
    %cst_34 = arith.constant 0.630957365 : f32
    %45 = vector.broadcast %cst_34 : f32 to vector<33x33xf32>
    %46 = arith.subf %44, %45 : vector<33x33xf32>
    %cst_35 = arith.constant dense<0xFF800000> : vector<33xf32>
    %47 = vector.multi_reduction <maximumf>, %46, %cst_35 [1] : vector<33x33xf32> to vector<33xf32>
    %48 = vector.shape_cast %47 : vector<33xf32> to vector<33x1xf32>
    %cst_36 = arith.constant dense<0x7F800000> : vector<33xf32>
    %49 = vector.multi_reduction <minimumf>, %46, %cst_36 [1] : vector<33x33xf32> to vector<33xf32>
    %50 = vector.shape_cast %49 : vector<33xf32> to vector<33x1xf32>
    %51 = vector.broadcast %50 : vector<33x1xf32> to vector<33x33xf32>
    %52 = arith.subf %46, %51 : vector<33x33xf32>
    %53 = arith.subf %48, %50 : vector<33x1xf32>
    %54 = tpu.reciprocal %53 {approx = true} : vector<33x1xf32> -> vector<33x1xf32>
    %55 = vector.broadcast %54 : vector<33x1xf32> to vector<33x33xf32>
    %56 = arith.mulf %52, %55 : vector<33x33xf32>
    %57 = arith.cmpf one, %56, %56 : vector<33x33xf32>
    %cst_37 = arith.constant 0.000000e+00 : f32
    %58 = vector.broadcast %cst_37 : f32 to vector<33x33xf32>
    %59 = arith.select %57, %58, %56 : vector<33x33xi1>, vector<33x33xf32>
    %c0_38 = arith.constant 0 : index
    %c0_39 = arith.constant 0 : index
    %60 = vector.load %arg5[%c0_38, %c0_39] : memref<64x33xf32, #tpu.memory_space<vmem>>, vector<64x33xf32>
    %61 = tpu.transpose %59, [1, 0] : vector<33x33xf32> -> vector<33x33xf32>
    %cst_40 = arith.constant dense<0.000000e+00> : vector<64x33xf32>
    %62 = tpu.matmul %60, %61, %cst_40 {dimension_numbers = #tpu.dot_dimension_numbers<[1], [0], [0], [1], [0, 0, 1, 1], [], []>} : vector<64x33xf32>, vector<33x33xf32>, vector<64x33xf32> -> vector<64x33xf32>
    %c0_41 = arith.constant 0 : index
    %c0_42 = arith.constant 0 : index
    %63 = vector.load %arg6[%c0_41, %c0_42] : memref<33x64xf32, #tpu.memory_space<vmem>>, vector<33x64xf32>
    %cst_43 = arith.constant dense<0.000000e+00> : vector<64x64xf32>
    %64 = tpu.matmul %62, %63, %cst_43 {dimension_numbers = #tpu.dot_dimension_numbers<[1], [0], [0], [1], [0, 0, 1, 1], [], []>} : vector<64x33xf32>, vector<33x64xf32>, vector<64x64xf32> -> vector<64x64xf32>
    %c0_44 = arith.constant 0 : index
    %c0_45 = arith.constant 0 : index
    %c0_46 = arith.constant 0 : index
    %65 = vector.load %arg10[%c0_44, %c0_45, %c0_46] : memref<1x64x64xf32, #tpu.memory_space<vmem>>, vector<1x64x64xf32>
    %66 = vector.shape_cast %65 : vector<1x64x64xf32> to vector<64x64xf32>
    %67 = vector.shape_cast %64 : vector<64x64xf32> to vector<1x64x64xf32>
    tpu.vector_store %arg10[%c0_44, %c0_45, %c0_46], %67 {strides = array<i32>} : memref<1x64x64xf32, #tpu.memory_space<vmem>>, vector<1x64x64xf32>,
    %cst_47 = arith.constant dense<0.000000e+00> : vector<64xf32>
    %68 = vector.multi_reduction <add>, %64, %cst_47 [0] : vector<64x64xf32> to vector<64xf32>
    %69 = vector.shape_cast %68 : vector<64xf32> to vector<1x64xf32>
    %cst_48 = arith.constant 6.400000e+01 : f32
    %70 = vector.broadcast %cst_48 : f32 to vector<1x64xf32>
    %71 = arith.divf %69, %70 : vector<1x64xf32>
    %cst_49 = arith.constant dense<0xFF800000> : vector<64xf32>
    %72 = vector.multi_reduction <maximumf>, %64, %cst_49 [0] : vector<64x64xf32> to vector<64xf32>
    %73 = vector.shape_cast %72 : vector<64xf32> to vector<1x64xf32>
    %c0_50 = arith.constant 0 : index
    %c0_51 = arith.constant 0 : index
    %c0_52 = arith.constant 0 : index
    %74 = vector.load %arg7[%c0_50, %c0_51, %c0_52] : memref<2x64x128xf32, #tpu.memory_space<vmem>>, vector<1x64x128xf32>
    %75 = vector.shape_cast %74 : vector<1x64x128xf32> to vector<64x128xf32>
    %cst_53 = arith.constant dense<0.000000e+00> : vector<1x128xf32>
    %76 = tpu.matmul %71, %75, %cst_53 {dimension_numbers = #tpu.dot_dimension_numbers<[1], [0], [0], [1], [0, 0, 1, 1], [], []>} : vector<1x64xf32>, vector<64x128xf32>, vector<1x128xf32> -> vector<1x128xf32>
    %c1_54 = arith.constant 1 : index
    %c0_55 = arith.constant 0 : index
    %c0_56 = arith.constant 0 : index
    %77 = vector.load %arg7[%c1_54, %c0_55, %c0_56] : memref<2x64x128xf32, #tpu.memory_space<vmem>>, vector<1x64x128xf32>
    %78 = vector.shape_cast %77 : vector<1x64x128xf32> to vector<64x128xf32>
    %cst_57 = arith.constant dense<0.000000e+00> : vector<1x128xf32>
    %79 = tpu.matmul %73, %78, %cst_57 {dimension_numbers = #tpu.dot_dimension_numbers<[1], [0], [0], [1], [0, 0, 1, 1], [], []>} : vector<1x64xf32>, vector<64x128xf32>, vector<1x128xf32> -> vector<1x128xf32>
    %80 = arith.addf %76, %79 : vector<1x128xf32>
    %c0_58 = arith.constant 0 : index
    %c0_59 = arith.constant 0 : index
    %81 = vector.load %arg8[%c0_58, %c0_59] : memref<1x128xf32, #tpu.memory_space<vmem>>, vector<1x128xf32>
    %82 = arith.addf %80, %81 : vector<1x128xf32>
    %c0_60 = arith.constant 0 : index
    %c0_61 = arith.constant 0 : index
    %c0_62 = arith.constant 0 : index
    %83 = vector.load %arg9[%c0_60, %c0_61, %c0_62] : memref<1x1x128xf32, #tpu.memory_space<vmem>>, vector<1x1x128xf32>
    %84 = vector.shape_cast %83 : vector<1x1x128xf32> to vector<1x128xf32>
    %85 = vector.shape_cast %82 : vector<1x128xf32> to vector<1x1x128xf32>
    tpu.vector_store %arg9[%c0_60, %c0_61, %c0_62], %85 {strides = array<i32>} : memref<1x1x128xf32, #tpu.memory_space<vmem>>, vector<1x1x128xf32>,
    return
  }
  func.func @transform_0(%arg0: i32) -> (i32, i32, i32) {
    %c0_i32 = arith.constant 0 : i32
    %c0_i32_0 = arith.constant 0 : i32
    %c0_i32_1 = arith.constant 0 : i32
    return %arg0, %c0_i32, %c0_i32_0 : i32, i32, i32
  }
  func.func @transform_1(%arg0: i32) -> (i32, i32, i32) {
    %c0_i32 = arith.constant 0 : i32
    %c0_i32_0 = arith.constant 0 : i32
    %c0_i32_1 = arith.constant 0 : i32
    %c0_i32_2 = arith.constant 0 : i32
    return %c0_i32, %c0_i32_0, %c0_i32_1 : i32, i32, i32
  }
  func.func @transform_2(%arg0: i32) -> (i32, i32) {
    %c0_i32 = arith.constant 0 : i32
    %c0_i32_0 = arith.constant 0 : i32
    %c0_i32_1 = arith.constant 0 : i32
    return %c0_i32, %c0_i32_0 : i32, i32
  }
  func.func @transform_3(%arg0: i32) -> (i32, i32) {
    %c0_i32 = arith.constant 0 : i32
    %c0_i32_0 = arith.constant 0 : i32
    %c0_i32_1 = arith.constant 0 : i32
    return %c0_i32, %c0_i32_0 : i32, i32
  }
  func.func @transform_4(%arg0: i32) -> (i32, i32) {
    %c0_i32 = arith.constant 0 : i32
    %c0_i32_0 = arith.constant 0 : i32
    %c0_i32_1 = arith.constant 0 : i32
    return %c0_i32, %c0_i32_0 : i32, i32
  }
  func.func @transform_5(%arg0: i32) -> (i32, i32) {
    %c0_i32 = arith.constant 0 : i32
    %c0_i32_0 = arith.constant 0 : i32
    %c0_i32_1 = arith.constant 0 : i32
    return %c0_i32, %c0_i32_0 : i32, i32
  }
  func.func @transform_6(%arg0: i32) -> (i32, i32, i32) {
    %c0_i32 = arith.constant 0 : i32
    %c0_i32_0 = arith.constant 0 : i32
    %c0_i32_1 = arith.constant 0 : i32
    %c0_i32_2 = arith.constant 0 : i32
    return %c0_i32, %c0_i32_0, %c0_i32_1 : i32, i32, i32
  }
  func.func @transform_7(%arg0: i32) -> (i32, i32) {
    %c0_i32 = arith.constant 0 : i32
    %c0_i32_0 = arith.constant 0 : i32
    %c0_i32_1 = arith.constant 0 : i32
    return %c0_i32, %c0_i32_0 : i32, i32
  }
  func.func @transform_8(%arg0: i32) -> (i32, i32, i32) {
    %c0_i32 = arith.constant 0 : i32
    %c0_i32_0 = arith.constant 0 : i32
    %c0_i32_1 = arith.constant 0 : i32
    return %arg0, %c0_i32, %c0_i32_0 : i32, i32, i32
  }
  func.func @transform_9(%arg0: i32) -> (i32, i32, i32) {
    %c0_i32 = arith.constant 0 : i32
    %c0_i32_0 = arith.constant 0 : i32
    %c0_i32_1 = arith.constant 0 : i32
    return %arg0, %c0_i32, %c0_i32_0 : i32, i32, i32
  }
}

</mosaic_0001>

<bundles_post_ra>
// kernel: model_forward.1
= control target key start
LH: loop header
LB: loop body
LE: loop exit
PB: predicated region body
PF: predicated region fallthrough
CT: control target
= control target key end

     0   :  { %s3134_s0 = inlined_call_operand.vmem [shape: f32[2,36,16], index: 0, kind: input, shape index: {}]   ;;  %s3135_s1 = inlined_call_operand.vmem [shape: f32[4,16,66], index: 1, kind: input, shape index: {}]   ;;  %s3136_s2 = inlined_call_operand.vmem [shape: f32[66,33], index: 2, kind: input, shape index: {}]   ;;  %s3137_s3 = inlined_call_operand.vmem [shape: f32[33,33], index: 3, kind: input, shape index: {}]   ;;  %s3138_s4 = inlined_call_operand.vmem [shape: f32[64,33], index: 4, kind: input, shape index: {}]   ;;  %s3139_s5 = inlined_call_operand.hbm [shape: f32[33,64], index: 5, kind: input, shape index: {}]   ;;  %s3140_s6 = inlined_call_operand.vmem [shape: f32[2,64,128], index: 6, kind: input, shape index: {}]   ;;  %s3141_s7 = inlined_call_operand.vmem [shape: f32[1,128], index: 7, kind: input, shape index: {}]   ;;  %s3142_s8 = inlined_call_operand.hbm [shape: f32[2,1,128], index: 8, kind: output, shape index: {0}]   ;;  %s3143_s9 = inlined_call_operand.hbm [shape: f32[2,64,64], index: 9, kind: output, shape index: {1}]  }
   0x1   :  { %3144 = sst [smem:[#allocation11_spill]] %s3134_s0 }
   0x2   :  { %3145 = sst [smem:[#allocation12_spill]] %s3135_s1 }
   0x3   :  { %15 = vsyncpa [#allocation3], 0 }
   0x4   :  { %16 = vsyncpa [#allocation4], 0 }
   0x5   :  { %18 = vsyncpa [#allocation4 + $0x1], 0 }
   0x6   :  { %19 = vsyncpa [#allocation7], 0 }
   0x7   :  { %21 = vsyncpa [#allocation7 + $0x1], 0  ;;  %s2579_s30 = smov 0   ;;  %s2581_s10 = smov 0  }
   0x8   :  { %s2583_s11 = smov 0   ;;  %s2585_s12 = smov 0  }
   0x9 LB: > { %s2600_s13 = sadd.s32 4294967295, %s2518_s12   ;;  %s1864_s14 = sadd.s32 4294967294, %s2518_s12   ;;  %s2518_s12 = sphi %s2585_s12, %s3156_s12   ;;  %s2514_s11 = sphi %s2583_s11, %s3155_s11   ;;  %s2510_s10 = sphi %s2581_s10, %s3154_s10   ;;  %s2506_s30 = sphi %s2579_s30, %s3153_s30  }
   0xa   : > { %s2604_s15 = sadd.s32 1, %s2518_s12   ;;  %s207_s16 = sadd.s32 1, %s2514_s11 }
   0xb   : > { %s204_s17 = ssub.s32 %s2518_s12, %s2604_s15  ;;  %p217_p0 = scmp.ne.s32.totalorder %s2514_s11, %s2510_s10 }
   0xc   : > { %p205_p1 = scmp.eq.s32.totalorder %s204_s17, 0  ;;  %p218_p2 = scmp.eq.s32.totalorder %s2600_s13, 1 }
   0xd   : > { %p223_p3 = scmp.ne.s32.totalorder %s2510_s10, %s2506_s30  ;;  %p224_p4 = scmp.eq.s32.totalorder %s1864_s14, 1 }
   0xe   : > { %s2615_s18 = scalar_select %p205_p1, %s2514_s11, %s207_s16  }
   0xf   : > { %p2617_p5 = por %p218_p2, %p217_p0  ;;  %p2621_p6 = por %p224_p4, %p223_p3 }
  0x10   : > { %p1865_p7 = scmp.ge.s32.totalorder %s2518_s12, 1  ;;  %p257_p8 = scmp.lt.s32.totalorder %s2518_s12, 3 }
  0x11   : > { %s3147_s20 = scalar_select %p2621_p6, 1, 0 }
  0x12   : > { %p2286_p9 = scmp.eq.s32.totalorder %s2600_s13, 0  ;;  %p2628_p10 = pnand %p1865_p7, %p257_p8 }
  0x13   : > { %s2520_s22 = smov [#allocation2]  }
  0x14   : > { %s281_s23 = sshll.u32 %s2520_s22, 4  ;;  %p2275_p11 = pneg %p2628_p10  ;;  %s282_s23 = int_to_ptr.vmem [resolvable:$true] %s281_s23 }
  0x15   : > { %s2409_s24 = scalar_lea.vmem %s282_s23, 640  ;;  %p2417_p3 = scmp.lt.s32.totalorder %s282_s23, %s282_s23 }
  0x16   : > { %p2276_p12 = pnand %p2286_p9, %p2275_p11  ;;  %p2410_p0 = scmp.ne.s32.totalorder %s282_s23, %s2409_s24 }
  0x17   : > { %p2418_p4 = scmp.lt.s32.totalorder %s2409_s24, %s2409_s24 }
  0x18   : > { %p2400_p13 = pneg %p2276_p12 }
  0x19   : > { %p2419_p6 = por %p2418_p4, %p2417_p3 }
  0x1a   : > { %p2412_p1 = pnand %p2410_p0, %p2400_p13 }
  0x1c   : > { %p2413_p2 = pneg %p2412_p1 }
  0x1e   : > { %p2420_p7 = pnand %p2419_p6, %p2413_p2 }
  0x20   : > { %2423 = shalt.err (!%p2420_p7)
}
  0x21   : > { %s2521_s25 = smov 128   ;;  %s2522_s26 = smov 8  }
  0x22   : > { %2278 = dma.hbm_to_vmem [thread:$0]  (!%p2276_p12), %s3139_s5, 640, %s282_s23, [#allocation3], %s2521_s25, %s2521_s25, %s2522_s26  }
  0x23   : > { %311 = sbr.rel (%p2628_p10) target bundleno = 1598 (0x63e), region = 52 }
  0x28   : > { %2493 = dma.done.wait (%p2286_p9), [#allocation3], 640  }
  0x29   : > { %2495 = vsyncadd (%p2286_p9), [#allocation3], 4294966656  ;;  %p351_p8 = scmp.lt.s32.totalorder %s2600_s13, 1  ;;  %v2523_v0 = vmov 0.0   ;;  %vm2524_vm0 = vmmov 0   ;;  %s3149_s0 = sld [smem:[#allocation11_spill]] }
  0x2a   : > { %2050 = vmatprep.subr.mxu0 %v2523_v0  ;;  %2069 = vmatprep.subr.mxu1 %v2523_v0  ;;  %s3150_s1 = sld [smem:[#allocation12_spill]]  ;;  %vm371_vm1 = vcmask 130048   ;;  %v831_v29 = vld [vmem:[%s3136_s2 + $0x40] sm:$0x3]  ;;  %vm848_vm2 = vcmask 1041408   ;;  %v830_v30 = vld [vmem:[%s3136_s2 + $0x38] sm:$0xff] }
  0x2b   : > { %2054 = vmatprep.mubr.msk.f32.mxu0 %vm2524_vm0, %v2523_v0  ;;  %2073 = vmatprep.mubr.msk.f32.mxu1 %vm2524_vm0, %v2523_v0  ;;  %s352_s29 = scalar_select %p351_p8, %s2600_s13, 1  ;;  %v829_v31 = vld [vmem:[%s3136_s2 + $0x30] sm:$0xff]  ;;  %v828_v32 = vld [vmem:[%s3136_s2 + $0x28] sm:$0xff]  ;;  %v827_v33 = vld [vmem:[%s3136_s2 + $0x20] sm:$0xff]  ;;  %vm832_vm3 = vcmask 539648   ;;  %vm998_vm4 = vcmask 1040384  }
  0x2c   : > { %v826_v34 = vld [vmem:[%s3136_s2 + $0x18] sm:$0xff]  ;;  %v825_v35 = vld [vmem:[%s3136_s2 + $0x10] sm:$0xff]  ;;  %v824_v36 = vld [vmem:[%s3136_s2 + $0x8] sm:$0xff]  ;;  %vm982_vm6 = vcmask 269312   ;;  %s1953_s23 = sshll.u32 %s2600_s13, 10 }
  0x2d   : > { %s2266_s14 = smul.u32 40, %s352_s29  ;;  %v823_v37 = vld [vmem:[%s3136_s2] sm:$0xff]  ;;  %s3071_s26 = scalar_lea.hbm %s3143_s9, %s1953_s23 }
  0x2e   : > { %s2525_s29 = smov [#allocation6]  }
  0x2f   : > { %s2656_s21 = scalar_lea.vmem %s3149_s0, %s2266_s14  ;;  %s2428_s14 = sshll.u32 %s2525_s29, 4  ;;  %s2429_s14 = int_to_ptr.vmem [resolvable:$false] %s2428_s14 }
  0x30   : > { %v1873_v1 = vld [vmem:[%s3150_s1 + $0x18] sm:$0xff]  ;;  %v362_v2 = vld [vmem:[%s3150_s1 + $0x8] sm:$0xff]  ;;  %v1872_v3 = vld [vmem:[%s3150_s1 + $0x10] sm:$0xff] }
  0x31   : > { %2051 = vmatpush3.msra.mxu0 %v1873_v1  ;;  %2070 = vmatpush3.msra.mxu1 %v362_v2  ;;  %v361_v4 = vld [vmem:[%s3150_s1] sm:$0xff]  ;;  %v1885_v7 = vld [vmem:[%s3150_s1 + $0x28] sm:$0xff]  ;;  %v1892_v8 = vld [vmem:[%s3150_s1 + $0x38] sm:$0xff] }
  0x32   : > { %v363_v5 = vld [vmem:[%s2656_s21 + $0x1] sm:$0xff]  ;;  %2052 = vmatprep.subr.mxu0 %v2523_v0  ;;  %2071 = vmatprep.subr.mxu1 %v2523_v0  ;;  %v364_v9 = vld [vmem:[%s2656_s21 + $0x9] sm:$0xff]  ;;  %v365_v13 = vld [vmem:[%s2656_s21 + $0x11] sm:$0xff] }
  0x33   : > { %v356_v6 = vld [vmem:[%s2656_s21] sm:$0xff]  ;;  %2053 = vmatpush3.msra.mxu0 %v1872_v3  ;;  %2072 = vmatpush3.msra.mxu1 %v361_v4  ;;  %v357_v10 = vld [vmem:[%s2656_s21 + $0x8] sm:$0xff]  ;;  %v1891_v12 = vld [vmem:[%s3150_s1 + $0x30] sm:$0xff] }
  0x34   : > { %2055 = vmatmul.mubr.msk.f32.vlgmr.msra.gmra.mxu0 %vm371_vm1, %v363_v5  ;;  %2074 = vmatmul.mubr.msk.f32.vlgmr.msra.gmra.mxu1 %vm371_vm1, %v356_v6  ;;  %v1884_v11 = vld [vmem:[%s3150_s1 + $0x20] sm:$0xff]  ;;  %v358_v14 = vld [vmem:[%s2656_s21 + $0x10] sm:$0xff]  ;;  %v359_v16 = vld [vmem:[%s2656_s21 + $0x18] sm:$0xff] }
  0x35   : > { %2088 = vmatprep.subr.mxu0 %v2523_v0  ;;  %2107 = vmatprep.subr.mxu1 %v2523_v0  ;;  %v366_v15 = vld [vmem:[%s2656_s21 + $0x19] sm:$0xff]  ;;  %v367_v17 = vld [vmem:[%s2656_s21 + $0x21] sm:$0x1]  ;;  %v582_v19 = vld [vmem:[%s2656_s21 + $0x2] sm:$0xff] }
  0x36   : > { %2089 = vmatpush3.msra.mxu0 %v1885_v7  ;;  %2057 = vmatprep.mubr.msk.f32.mxu0 %vm2524_vm0, %v2523_v0  ;;  %v360_v18 = vld [vmem:[%s2656_s21 + $0x20] sm:$0x1]  ;;  %v700_v20 = vld [vmem:[%s2656_s21 + $0x3] sm:$0xff]  ;;  %v701_v22 = vld [vmem:[%s2656_s21 + $0xb] sm:$0xff] }
  0x37   : > { %2076 = vmatprep.mubr.msk.f32.mxu1 %vm2524_vm0, %v2523_v0  ;;  %2108 = vmatpush3.msra.mxu1 %v1892_v8  ;;  %v583_v21 = vld [vmem:[%s2656_s21 + $0xa] sm:$0xff]  ;;  %v584_v23 = vld [vmem:[%s2656_s21 + $0x12] sm:$0xff]  ;;  %v585_v25 = vld [vmem:[%s2656_s21 + $0x1a] sm:$0xff] }
  0x38   : > { %2058 = vmatmul.mubr.msk.f32.gmra.mxu0 %vm371_vm1, %v364_v9  ;;  %2077 = vmatmul.mubr.msk.f32.gmra.mxu1 %vm371_vm1, %v357_v10  ;;  %v702_v24 = vld [vmem:[%s2656_s21 + $0x13] sm:$0xff]  ;;  %v703_v26 = vld [vmem:[%s2656_s21 + $0x1b] sm:$0xff]  ;;  %v704_v28 = vld [vmem:[%s2656_s21 + $0x23] sm:$0x1] }
  0x39   : > { %2060 = vmatprep.mubr.msk.f32.mxu0 %vm2524_vm0, %v2523_v0  ;;  %2079 = vmatprep.mubr.msk.f32.mxu1 %vm2524_vm0, %v2523_v0  ;;  %v586_v27 = vld [vmem:[%s2656_s21 + $0x22] sm:$0x1]  ;;  %s3025_s21 = sand.u32 1, %s2510_s10  }
  0x3a   : > { %2090 = vmatprep.subr.mxu0 %v2523_v0  ;;  %2109 = vmatprep.subr.mxu1 %v2523_v0  ;;  %s1870_s16 = sshll.u32 %s3025_s21, 6 }
  0x3b   : > { %2091 = vmatpush3.msra.mxu0 %v1884_v11  ;;  %2110 = vmatpush3.msra.mxu1 %v1891_v12  ;;  %s3028_s17 = scalar_lea.vmem [#allocation6], %s1870_s16  ;;  %s2430_s16 = scalar_lea.vmem %s2429_s14, 2048 }
  0x3c   : > { %2061 = vmatmul.mubr.msk.f32.gmra.mxu0 %vm371_vm1, %v365_v13  ;;  %2080 = vmatmul.mubr.msk.f32.gmra.mxu1 %vm371_vm1, %v358_v14  ;;  %s1762_s22 = sshll.u32 %s3028_s17, 4  ;;  %s3065_s22 = int_to_ptr.vmem [resolvable:$true] %s1762_s22 }
  0x3d   : > { %2063 = vmatprep.mubr.msk.f32.mxu0 %vm2524_vm0, %v2523_v0  ;;  %2082 = vmatprep.mubr.msk.f32.mxu1 %vm2524_vm0, %v2523_v0  ;;  %s2424_s28 = scalar_lea.vmem %s3065_s22, 1024  ;;  %p2431_p11 = scmp.lt.s32.totalorder %s3065_s22, %s2429_s14 }
  0x3e   : > { %2126 = vmatprep.subr.mxu0 %v2523_v0  ;;  %2159 = vmatprep.subr.mxu1 %v2523_v0  ;;  %p2425_p6 = scmp.ne.s32.totalorder %s3065_s22, %s2424_s28  ;;  %p2432_p12 = scmp.lt.s32.totalorder %s2430_s16, %s2424_s28 }
  0x40   : > { %2064 = vmatmul.mubr.msk.f32.gmra.mxu0 %vm371_vm1, %v366_v15  ;;  %2083 = vmatmul.mubr.msk.f32.gmra.mxu1 %vm371_vm1, %v359_v16  ;;  %p2426_p9 = pnand %p2425_p6, %p2617_p5  ;;  %p2433_p13 = por %p2432_p12, %p2431_p11 }
  0x41   : > { %2066 = vmatprep.mubr.msk.f32.mxu0 %vm2524_vm0, %v2523_v0  ;;  %2085 = vmatprep.mubr.msk.f32.mxu1 %vm2524_vm0, %v2523_v0 }
  0x42   : > { %p2427_p10 = pneg %p2426_p9 }
  0x44   : > { %2067 = vmatmul.mubr.msk.f32.gmra.mxu0 %vm371_vm1, %v367_v17  ;;  %2086 = vmatmul.mubr.msk.f32.gmra.mxu1 %vm371_vm1, %v360_v18  ;;  %p2434_p0 = pnand %p2433_p13, %p2427_p10 }
  0x45   : > { %2092 = vmatprep.mubr.msk.f32.mxu0 %vm2524_vm0, %v2523_v0  ;;  %2111 = vmatprep.mubr.msk.f32.mxu1 %vm2524_vm0, %v2523_v0 }
  0x48   : > { %2093 = vmatmul.mubr.msk.f32.vlgmr.msra.gmra.mxu0 %vm371_vm1, %v582_v19  ;;  %2112 = vmatmul.mubr.msk.f32.vlgmr.msra.gmra.mxu1 %vm371_vm1, %v700_v20 }
  0x49   : > { %2095 = vmatprep.mubr.msk.f32.mxu0 %vm2524_vm0, %v2523_v0  ;;  %2114 = vmatprep.mubr.msk.f32.mxu1 %vm2524_vm0, %v2523_v0 }
  0x4a   : > { %2127 = vmatpush3.msk.msra.mxu0 %vm848_vm2, %v831_v29 }
  0x4b   : > { %2128 = vmatprep.subr.mxu0 %v2523_v0 }
  0x4c   : > { %2096 = vmatmul.mubr.msk.f32.gmra.mxu0 %vm371_vm1, %v583_v21  ;;  %2115 = vmatmul.mubr.msk.f32.gmra.mxu1 %vm371_vm1, %v701_v22 }
  0x4d   : > { %2098 = vmatprep.mubr.msk.f32.mxu0 %vm2524_vm0, %v2523_v0  ;;  %2117 = vmatprep.mubr.msk.f32.mxu1 %vm2524_vm0, %v2523_v0 }
  0x4e   : > { %2129 = vmatpush3.msra.mxu0 %v830_v30 }
  0x4f   : > { %2130 = vmatprep.subr.mxu0 %v2523_v0 }
  0x50   : > { %2099 = vmatmul.mubr.msk.f32.gmra.mxu0 %vm371_vm1, %v584_v23  ;;  %2118 = vmatmul.mubr.msk.f32.gmra.mxu1 %vm371_vm1, %v702_v24 }
  0x51   : > { %2101 = vmatprep.mubr.msk.f32.mxu0 %vm2524_vm0, %v2523_v0  ;;  %2120 = vmatprep.mubr.msk.f32.mxu1 %vm2524_vm0, %v2523_v0 }
  0x52   : > { %2131 = vmatpush3.msra.mxu0 %v829_v31 }
  0x53   : > { %2132 = vmatprep.subr.mxu0 %v2523_v0 }
  0x54   : > { %2102 = vmatmul.mubr.msk.f32.gmra.mxu0 %vm371_vm1, %v585_v25  ;;  %2121 = vmatmul.mubr.msk.f32.gmra.mxu1 %vm371_vm1, %v703_v26 }
  0x55   : > { %2104 = vmatprep.mubr.msk.f32.mxu0 %vm2524_vm0, %v2523_v0  ;;  %2123 = vmatprep.mubr.msk.f32.mxu1 %vm2524_vm0, %v2523_v0 }
  0x56   : > { %2133 = vmatpush3.msra.mxu0 %v828_v32 }
  0x57   : > { %2134 = vmatprep.subr.mxu0 %v2523_v0 }
  0x58   : > { %2105 = vmatmul.mubr.msk.f32.gmra.mxu0 %vm371_vm1, %v586_v27  ;;  %2124 = vmatmul.mubr.msk.f32.gmra.mxu1 %vm371_vm1, %v704_v28  ;;  %vm1174_vm1 = vcmask 262144  }
  0x59   : > { %2144 = vmatprep.mubr.msk.f32.mxu0 %vm2524_vm0, %v2523_v0  ;;  %2169 = vmatprep.mubr.msk.f32.mxu1 %vm2524_vm0, %v2523_v0 }
  0x5a   : > { %2135 = vmatpush3.msra.mxu0 %v827_v33 }
  0x5b   : > { %2136 = vmatprep.subr.mxu0 %v2523_v0 }
  0x5c   : > { %2137 = vmatpush3.msra.mxu0 %v826_v34 }
  0x5d   : > { %2138 = vmatprep.subr.mxu0 %v2523_v0 }
  0x5e   : > { %2139 = vmatpush3.msra.mxu0 %v825_v35  ;;  %v981_v35 = vld [vmem:[%s3137_s3 + $0x20] sm:$0x1] }
  0x5f   : > { %2140 = vmatprep.subr.mxu0 %v2523_v0  ;;  %2160 = vmatpush3.msk.msra.mxu1 %vm998_vm4, %v981_v35 }
  0x60   : > { %2141 = vmatpush3.msra.mxu0 %v824_v36  ;;  %2161 = vmatprep.subr.mxu1 %v2523_v0  ;;  %v980_v36 = vld [vmem:[%s3137_s3 + $0x18] sm:$0xff] }
  0x61   : > { %2142 = vmatprep.subr.mxu0 %v2523_v0  ;;  %2162 = vmatpush3.msra.mxu1 %v980_v36 }
  0x62   : > { %2143 = vmatpush3.msra.mxu0 %v823_v37  ;;  %2163 = vmatprep.subr.mxu1 %v2523_v0  ;;  %v979_v37 = vld [vmem:[%s3137_s3 + $0x10] sm:$0xff] }
  0x63   : > { %2164 = vmatpush3.msra.mxu1 %v979_v37 }
  0x64   : > { %2165 = vmatprep.subr.mxu1 %v2523_v0 }
  0xf4   : > { %v453_v38 = vpop.f32.mrf.mxu0  ;;  %v558_v39 = vpop.f32.mrf.mxu1 }
  0xf5   : > { %v559_v58 = vadd.f32 %v558_v39, %v453_v38  ;;  %v978_v38 = vld [vmem:[%s3137_s3 + $0x8] sm:$0xff]  ;;  %v977_v39 = vld [vmem:[%s3137_s3] sm:$0xff] }
  0xf6   : > { %v2056_v40 = vpop.f32.mrf.mxu0  ;;  %v2075_v41 = vpop.f32.mrf.mxu1  ;;  %2166 = vmatpush3.msra.mxu1 %v978_v38 }
  0xf7   : > { %2167 = vmatprep.subr.mxu1 %v2523_v0 }
  0xf8   : > { %v458_v42 = vpop.f32.mrf.mxu0  ;;  %v563_v43 = vpop.f32.mrf.mxu1  ;;  %2168 = vmatpush3.msra.mxu1 %v977_v39 }
  0xf9   : > { %v564_v1 = vadd.f32 %v563_v43, %v458_v42 }
  0xfa   : > { %v2059_v44 = vpop.f32.mrf.mxu0  ;;  %v2078_v45 = vpop.f32.mrf.mxu1 }
  0xfc   : > { %v463_v46 = vpop.f32.mrf.mxu0  ;;  %v568_v47 = vpop.f32.mrf.mxu1 }
  0xfd   : > { %v569_v9 = vadd.f32 %v568_v47, %v463_v46 }
  0xfe   : > { %v2062_v48 = vpop.f32.mrf.mxu0  ;;  %v2081_v49 = vpop.f32.mrf.mxu1 }
 0x100   : > { %v468_v50 = vpop.f32.mrf.mxu0  ;;  %v573_v51 = vpop.f32.mrf.mxu1 }
 0x101   : > { %v574_v17 = vadd.f32 %v573_v51, %v468_v50 }
 0x102   : > { %v2065_v52 = vpop.f32.mrf.mxu0  ;;  %v2084_v53 = vpop.f32.mrf.mxu1 }
 0x104   : > { %v473_v54 = vpop.f32.mrf.mxu0  ;;  %v578_v55 = vpop.f32.mrf.mxu1 }
 0x105   : > { %v579_v25 = vadd.f32 %v578_v55, %v473_v54 }
 0x106   : > { %v2068_v56 = vpop.f32.mrf.mxu0  ;;  %v2087_v57 = vpop.f32.mrf.mxu1 }
 0x108   : > { %v671_v59 = vpop.f32.mrf.mxu0  ;;  %v789_v60 = vpop.f32.mrf.mxu1 }
 0x109   : > { %v695_v61 = vadd.f32 %v671_v59, %v559_v58 }
 0x10a   : > { %v2094_v62 = vpop.f32.mrf.mxu0  ;;  %v2113_v63 = vpop.f32.mrf.mxu1 }
 0x10b   : > { %v813_v2 = vadd.f32 %v789_v60, %v695_v61 }
 0x10c   : > { %v676_v3 = vpop.f32.mrf.mxu0  ;;  %v794_v4 = vpop.f32.mrf.mxu1 }
 0x10d   : > { %v818_v5 = vmul.f32 %v813_v2, %v813_v2  ;;  %v696_v6 = vadd.f32 %v676_v3, %v564_v1 }
 0x10e   : > { %v2097_v7 = vpop.f32.mrf.mxu0  ;;  %v2116_v8 = vpop.f32.mrf.mxu1 }
 0x10f   : > { %v814_v10 = vadd.f32 %v794_v4, %v696_v6  ;;  %2145 = vmatmul.mubr.msk.f32.vlgmr.msra.gmra.mxu0 %vm832_vm3, %v818_v5 }
 0x110   : > { %v681_v11 = vpop.f32.mrf.mxu0  ;;  %v799_v12 = vpop.f32.mrf.mxu1  ;;  %2147 = vmatprep.mubr.msk.f32.mxu0 %vm2524_vm0, %v2523_v0 }
 0x111   : > { %v819_v13 = vmul.f32 %v814_v10, %v814_v10  ;;  %v697_v14 = vadd.f32 %v681_v11, %v569_v9 }
 0x112   : > { %v2100_v15 = vpop.f32.mrf.mxu0  ;;  %v2119_v16 = vpop.f32.mrf.mxu1 }
 0x113   : > { %v815_v18 = vadd.f32 %v799_v12, %v697_v14  ;;  %2148 = vmatmul.mubr.msk.f32.gmra.mxu0 %vm832_vm3, %v819_v13 }
 0x114   : > { %v686_v19 = vpop.f32.mrf.mxu0  ;;  %v804_v20 = vpop.f32.mrf.mxu1  ;;  %2150 = vmatprep.mubr.msk.f32.mxu0 %vm2524_vm0, %v2523_v0 }
 0x115   : > { %v820_v21 = vmul.f32 %v815_v18, %v815_v18  ;;  %v698_v22 = vadd.f32 %v686_v19, %v574_v17 }
 0x116   : > { %v2103_v23 = vpop.f32.mrf.mxu0  ;;  %v2122_v24 = vpop.f32.mrf.mxu1 }
 0x117   : > { %v816_v26 = vadd.f32 %v804_v20, %v698_v22  ;;  %2151 = vmatmul.mubr.msk.f32.gmra.mxu0 %vm832_vm3, %v820_v21 }
 0x118   : > { %v691_v27 = vpop.f32.mrf.mxu0  ;;  %v809_v28 = vpop.f32.mrf.mxu1  ;;  %2153 = vmatprep.mubr.msk.f32.mxu0 %vm2524_vm0, %v2523_v0 }
 0x119   : > { %v821_v29 = vmul.f32 %v816_v26, %v816_v26  ;;  %v699_v30 = vadd.f32 %v691_v27, %v579_v25 }
 0x11a   : > { %v2106_v31 = vpop.f32.mrf.mxu0  ;;  %v2125_v32 = vpop.f32.mrf.mxu1 }
 0x11b   : > { %v817_v33 = vadd.f32 %v809_v28, %v699_v30  ;;  %2154 = vmatmul.mubr.msk.f32.gmra.mxu0 %vm832_vm3, %v821_v29 }
 0x11c   : > { %2156 = vmatprep.mubr.msk.f32.mxu0 %vm2524_vm0, %v2523_v0 }
 0x11d   : > { %v822_v34 = vmul.f32 %v817_v33, %v817_v33 }
 0x11f   : > { %2157 = vmatmul.mubr.msk.f32.gmra.mxu0 %vm832_vm3, %v822_v34 }
 0x1cf   : > { %v918_v40 = vpop.f32.mrf.mxu0 }
 0x1d0   : > { %v919_v41 = vadd.f32 1e-08, %v918_v40 }
 0x1d1   : > { %v2146_v42 = vpop.f32.mrf.mxu0 }
 0x1d2   : > { %2328 = vrsqrt.f32 %v919_v41  ;;  %vm944_vm5 = vcmp.eq.f32.partialorder %v919_v41, inf  ;;  %v947_v57 = vand.u32 2147483648, %v919_v41  ;;  %vm946_vm7 = vcmp.eq.f32.partialorder %v919_v41, 0.0 }
 0x1d3   : > { %v923_v43 = vpop.f32.mrf.mxu0 }
 0x1d4   : > { %v924_v44 = vadd.f32 1e-08, %v923_v43 }
 0x1d5   : > { %v2149_v45 = vpop.f32.mrf.mxu0 }
 0x1d6   : > { %2330 = vrsqrt.f32 %v924_v44  ;;  %vm951_vm8 = vcmp.eq.f32.partialorder %v924_v44, inf  ;;  %v954_v62 = vand.u32 2147483648, %v924_v44  ;;  %vm953_vm9 = vcmp.eq.f32.partialorder %v924_v44, 0.0 }
 0x1d7   : > { %v928_v46 = vpop.f32.mrf.mxu0 }
 0x1d8   : > { %v929_v47 = vadd.f32 1e-08, %v928_v46 }
 0x1d9   : > { %v2152_v48 = vpop.f32.mrf.mxu0 }
 0x1da   : > { %2332 = vrsqrt.f32 %v929_v47  ;;  %vm958_vm10 = vcmp.eq.f32.partialorder %v929_v47, inf  ;;  %v961_v4 = vand.u32 2147483648, %v929_v47  ;;  %vm960_vm11 = vcmp.eq.f32.partialorder %v929_v47, 0.0 }
 0x1db   : > { %v933_v49 = vpop.f32.mrf.mxu0 }
 0x1dc   : > { %v934_v50 = vadd.f32 1e-08, %v933_v49 }
 0x1dd   : > { %v2155_v51 = vpop.f32.mrf.mxu0 }
 0x1de   : > { %2334 = vrsqrt.f32 %v934_v50  ;;  %vm965_vm12 = vcmp.eq.f32.partialorder %v934_v50, inf  ;;  %v968_v9 = vand.u32 2147483648, %v934_v50  ;;  %vm967_vm13 = vcmp.eq.f32.partialorder %v934_v50, 0.0 }
 0x1df   : > { %v2329_v52 = vpop.eup %2328  ;;  %v938_v53 = vpop.f32.mrf.mxu0 }
 0x1e0   : > { %v939_v54 = vadd.f32 1e-08, %v938_v53  ;;  %v943_v55 = vmul.f32 %v2329_v52, %v919_v41 }
 0x1e1   : > { %v2158_v56 = vpop.f32.mrf.mxu0 }
 0x1e2   : > { %2336 = vrsqrt.f32 %v939_v54  ;;  %v945_v58 = vsel %vm944_vm5, %v919_v41, %v943_v55  ;;  %vm972_vm14 = vcmp.eq.f32.partialorder %v939_v54, inf  ;;  %v975_v14 = vand.u32 2147483648, %v939_v54 }
 0x1e3   : > { %v2331_v59 = vpop.eup %2330  ;;  %v2838_v60 = vsel %vm946_vm7, %v947_v57, %v945_v58  ;;  %vm974_vm15 = vcmp.eq.f32.partialorder %v939_v54, 0.0 }
 0x1e4   : > { %2170 = vmatmul.mubr.msk.f32.vlgmr.msra.gmra.mxu1 %vm982_vm6, %v2838_v60  ;;  %v950_v61 = vmul.f32 %v2331_v59, %v924_v44 }
 0x1e5   : > { %2172 = vmatprep.mubr.msk.f32.mxu1 %vm2524_vm0, %v2523_v0 }
 0x1e6   : > { %v952_v63 = vsel %vm951_vm8, %v924_v44, %v950_v61 }
 0x1e7   : > { %v2333_v1 = vpop.eup %2332  ;;  %v2844_v2 = vsel %vm953_vm9, %v954_v62, %v952_v63 }
 0x1e8   : > { %2173 = vmatmul.mubr.msk.f32.gmra.mxu1 %vm982_vm6, %v2844_v2  ;;  %v957_v3 = vmul.f32 %v2333_v1, %v929_v47 }
 0x1e9   : > { %2175 = vmatprep.mubr.msk.f32.mxu1 %vm2524_vm0, %v2523_v0 }
 0x1ea   : > { %v959_v5 = vsel %vm958_vm10, %v929_v47, %v957_v3 }
 0x1eb   : > { %v2335_v6 = vpop.eup %2334  ;;  %v2850_v7 = vsel %vm960_vm11, %v961_v4, %v959_v5 }
 0x1ec   : > { %2176 = vmatmul.mubr.msk.f32.gmra.mxu1 %vm982_vm6, %v2850_v7  ;;  %v964_v8 = vmul.f32 %v2335_v6, %v934_v50 }
 0x1ed   : > { %2178 = vmatprep.mubr.msk.f32.mxu1 %vm2524_vm0, %v2523_v0 }
 0x1ee   : > { %v966_v10 = vsel %vm965_vm12, %v934_v50, %v964_v8 }
 0x1ef   : > { %v2337_v11 = vpop.eup %2336  ;;  %v2856_v12 = vsel %vm967_vm13, %v968_v9, %v966_v10 }
 0x1f0   : > { %2179 = vmatmul.mubr.msk.f32.gmra.mxu1 %vm982_vm6, %v2856_v12  ;;  %v971_v13 = vmul.f32 %v2337_v11, %v939_v54 }
 0x1f1   : > { %2181 = vmatprep.mubr.msk.f32.mxu1 %vm2524_vm0, %v2523_v0 }
 0x1f2   : > { %v973_v15 = vsel %vm972_vm14, %v939_v54, %v971_v13 }
 0x1f3   : > { %v2862_v16 = vsel %vm974_vm15, %v975_v14, %v973_v15 }
 0x1f4   : > { %2182 = vmatmul.mubr.msk.f32.gmra.mxu1 %vm982_vm6, %v2862_v16 }
 0x2a4   : > { %v1068_v17 = vpop.f32.mrf.mxu1 }
 0x2a5   : > { %v1069_v18 = vadd.f32 1e-06, %v1068_v17 }
 0x2a6   : > { %v2171_v19 = vpop.f32.mrf.mxu1 }
 0x2a7   : > { %2338 = vlog2.f32 %v1069_v18 }
 0x2a8   : > { %v1073_v20 = vpop.f32.mrf.mxu1 }
 0x2a9   : > { %v1074_v21 = vadd.f32 1e-06, %v1073_v20 }
 0x2aa   : > { %v2174_v22 = vpop.f32.mrf.mxu1 }
 0x2ab   : > { %2340 = vlog2.f32 %v1074_v21 }
 0x2ac   : > { %v1078_v23 = vpop.f32.mrf.mxu1 }
 0x2ad   : > { %v1079_v24 = vadd.f32 1e-06, %v1078_v23 }
 0x2ae   : > { %v2177_v25 = vpop.f32.mrf.mxu1 }
 0x2af   : > { %2342 = vlog2.f32 %v1079_v24 }
 0x2b0   : > { %v1083_v26 = vpop.f32.mrf.mxu1 }
 0x2b1   : > { %v1084_v27 = vadd.f32 1e-06, %v1083_v26 }
 0x2b2   : > { %v2180_v28 = vpop.f32.mrf.mxu1 }
 0x2b3   : > { %2344 = vlog2.f32 %v1084_v27 }
 0x2b4   : > { %v2339_v29 = vpop.eup %2338  ;;  %v1088_v30 = vpop.f32.mrf.mxu1 }
 0x2b5   : > { %v1089_v31 = vadd.f32 1e-06, %v1088_v30  ;;  %v1093_v32 = vmul.f32 0.6931472, %v2339_v29 }
 0x2b6   : > { %v2183_v33 = vpop.f32.mrf.mxu1 }
 0x2b7   : > { %2346 = vlog2.f32 %v1089_v31  ;;  %v1102_v36 = vmul.f32 0.6, %v1093_v32 }
 0x2b8   : > { %v2341_v34 = vpop.eup %2340 }
 0x2b9   : > { %v1095_v35 = vmul.f32 0.6931472, %v2341_v34  ;;  %v1107_v41 = vmul.f32 1.442695, %v1102_v36 }
 0x2bb   : > { %v1103_v37 = vmul.f32 0.6, %v1095_v35 }
 0x2bc   : > { %v2343_v38 = vpop.eup %2342 }
 0x2bd   : > { %v1109_v39 = vmul.f32 1.442695, %v1103_v37  ;;  %v1097_v40 = vmul.f32 0.6931472, %v2343_v38 }
 0x2bf   : > { %2348 = vpow2.f32 %v1109_v39  ;;  %v1104_v42 = vmul.f32 0.6, %v1097_v40 }
 0x2c0   : > { %v2345_v43 = vpop.eup %2344  ;;  %2350 = vpow2.f32 %v1107_v41 }
 0x2c1   : > { %v1111_v44 = vmul.f32 1.442695, %v1104_v42  ;;  %v1099_v45 = vmul.f32 0.6931472, %v2345_v43 }
 0x2c3   : > { %2352 = vpow2.f32 %v1111_v44  ;;  %v1105_v46 = vmul.f32 0.6, %v1099_v45 }
 0x2c4   : > { %v2347_v47 = vpop.eup %2346 }
 0x2c5   : > { %v1113_v48 = vmul.f32 1.442695, %v1105_v46  ;;  %v1101_v49 = vmul.f32 0.6931472, %v2347_v47 }
 0x2c7   : > { %2354 = vpow2.f32 %v1113_v48  ;;  %v1106_v50 = vmul.f32 0.6, %v1101_v49  ;;  %v1223_v49 = vld [vmem:[%s3138_s4] sm:$0xff] }
 0x2c8   : > { %2194 = vmatprep.mubr.msk.f32.mxu0 %vm982_vm6, %v1223_v49  ;;  %v1569_v49 = vld [vmem:[%s3140_s6 + $0x20] sm:$0xff] }
 0x2c9   : > { %v1115_v51 = vmul.f32 1.442695, %v1106_v50  ;;  %v1379_v50 = vld [vmem:[#allocation2 + $0x20] sm:$0x1] }
 0x2ca   : > { %2206 = vmatprep.subr.msk.mxu1 %vm998_vm4, %v1379_v50 }
 0x2cb   : > { %2356 = vpow2.f32 %v1115_v51  ;;  %v1378_v51 = vld [vmem:[#allocation2 + $0x18] sm:$0xff]  ;;  %2207 = vmatpush3.msk.msra.mxu1 %vm998_vm4, %v1379_v50 }
 0x2cc   : > { %v2349_v52 = vpop.eup %2348  ;;  %2208 = vmatprep.subr.mxu1 %v1378_v51  ;;  %v1940_v50 = vld [vmem:[%s3140_s6 + $0x58] sm:$0xff] }
 0x2cd   : > { %2358 = vrcp.f32 %v2349_v52  ;;  %v2351_v53 = vpop.eup %2350  ;;  %v1377_v52 = vld [vmem:[#allocation2 + $0x10] sm:$0xff]  ;;  %2209 = vmatpush3.msra.mxu1 %v1378_v51  ;;  %v1568_v51 = vld [vmem:[%s3140_s6 + $0x18] sm:$0xff] }
 0x2ce   : > { %2210 = vmatprep.subr.mxu1 %v1377_v52 }
 0x2cf   : > { %2211 = vmatpush3.msra.mxu1 %v1377_v52  ;;  %v1939_v52 = vld [vmem:[%s3140_s6 + $0x50] sm:$0xff] }
 0x2d0   : > { %v2353_v54 = vpop.eup %2352 }
 0x2d1   : > { %2360 = vrcp.f32 %v2353_v54 }
 0x2d2   : > { %2362 = vrcp.f32 %v2351_v53  ;;  %v1376_v53 = vld [vmem:[#allocation2 + $0x8] sm:$0xff] }
 0x2d3   : > { %2212 = vmatprep.subr.mxu1 %v1376_v53 }
 0x2d4   : > { %v2355_v55 = vpop.eup %2354  ;;  %2213 = vmatpush3.msra.mxu1 %v1376_v53  ;;  %v1567_v53 = vld [vmem:[%s3140_s6 + $0x10] sm:$0xff] }
 0x2d5   : > { %2364 = vrcp.f32 %v2355_v55 }
 0x2d8   : > { %v2357_v56 = vpop.eup %2356 }
 0x2d9   : > { %2366 = vrcp.f32 %v2357_v56 }
 0x2da   : > { %v2359_v57 = vpop.eup %2358 }
 0x2db   : > { %v1123_v59 = vmul.f32 %v2359_v57, %v2844_v2 }
 0x2dd   : > { %v1128_v3 = vadd.f32 0.1, %v1123_v59 }
 0x2de   : > { %v2361_v58 = vpop.eup %2360 }
 0x2df   : > { %v2363_v61 = vpop.eup %2362  ;;  %v1124_v62 = vmul.f32 %v2361_v58, %v2850_v7 }
 0x2e0   : > { %v1122_v4 = vmul.f32 %v2363_v61, %v2838_v60 }
 0x2e1   : > { %v1129_v63 = vadd.f32 0.1, %v1124_v62 }
 0x2e2   : > { %v2365_v1 = vpop.eup %2364  ;;  %v1127_v9 = vadd.f32 0.1, %v1122_v4 }
 0x2e3   : > { %v1125_v5 = vmul.f32 %v2365_v1, %v2856_v12  ;;  %2368 = vlog2.f32 %v1129_v63 }
 0x2e4   : > { %2370 = vlog2.f32 %v1128_v3 }
 0x2e5   : > { %v1130_v6 = vadd.f32 0.1, %v1125_v5 }
 0x2e6   : > { %v2367_v8 = vpop.eup %2366 }
 0x2e7   : > { %2372 = vlog2.f32 %v1130_v6  ;;  %v1126_v10 = vmul.f32 %v2367_v8, %v2862_v16 }
 0x2e8   : > { %2374 = vlog2.f32 %v1127_v9 }
 0x2e9   : > { %v1131_v11 = vadd.f32 0.1, %v1126_v10 }
 0x2eb   : > { %2376 = vlog2.f32 %v1131_v11 }
 0x2f0   : > { %v2369_v2 = vpop.eup %2368 }
 0x2f1   : > { %v1137_v7 = vmul.f32 0.6931472, %v2369_v2  ;;  %v2371_v13 = vpop.eup %2370 }
 0x2f2   : > { %v1135_v12 = vmul.f32 0.6931472, %v2371_v13 }
 0x2f3   : > { %v1144_v17 = vmul.f32 0.2, %v1137_v7 }
 0x2f4   : > { %v2373_v14 = vpop.eup %2372  ;;  %v1143_v24 = vmul.f32 0.2, %v1135_v12 }
 0x2f5   : > { %v1139_v15 = vmul.f32 0.6931472, %v2373_v14  ;;  %v2375_v60 = vpop.eup %2374  ;;  %v1151_v22 = vmul.f32 1.442695, %v1144_v17 }
 0x2f6   : > { %v1133_v16 = vmul.f32 0.6931472, %v2375_v60  ;;  %v1149_v26 = vmul.f32 1.442695, %v1143_v24 }
 0x2f7   : > { %v1145_v18 = vmul.f32 0.2, %v1139_v15 }
 0x2f8   : > { %v2377_v19 = vpop.eup %2376  ;;  %v1142_v27 = vmul.f32 0.2, %v1133_v16 }
 0x2f9   : > { %v1153_v20 = vmul.f32 1.442695, %v1145_v18  ;;  %v1141_v21 = vmul.f32 0.6931472, %v2377_v19 }
 0x2fa   : > { %v1147_v28 = vmul.f32 1.442695, %v1142_v27  ;;  %v1225_v27 = vld [vmem:[%s3138_s4 + $0x10] sm:$0xff] }
 0x2fb   : > { %2378 = vpow2.f32 %v1153_v20  ;;  %v1146_v23 = vmul.f32 0.2, %v1141_v21 }
 0x2fc   : > { %2380 = vpow2.f32 %v1151_v22 }
 0x2fd   : > { %v1155_v25 = vmul.f32 1.442695, %v1146_v23 }
 0x2ff   : > { %2382 = vpow2.f32 %v1155_v25 }
 0x300   : > { %2384 = vpow2.f32 %v1149_v26  ;;  %v1224_v26 = vld [vmem:[%s3138_s4 + $0x8] sm:$0xff] }
 0x301   : > { %2386 = vpow2.f32 %v1147_v28  ;;  %v1226_v28 = vld [vmem:[%s3138_s4 + $0x18] sm:$0xff] }
 0x308   : > { %v2379_v29 = vpop.eup %2378 }
 0x309   : > { %v2871_v30 = vadd.f32 -0.63095737, %v2379_v29  ;;  %v2381_v31 = vpop.eup %2380  ;;  %v1227_v29 = vld [vmem:[%s3138_s4 + $0x20] sm:$0xff] }
 0x30a   : > { %v2880_v37 = vadd.f32 -0.63095737, %v2381_v31  ;;  %v1229_v31 = vld [vmem:[%s3138_s4 + $0x30] sm:$0xff] }
 0x30b   : > { %v1171_v32 = vsel %vm982_vm6, %v2871_v30, -inf  ;;  %v1187_v35 = vsel %vm982_vm6, %v2871_v30, inf }
 0x30c   : > { %v2383_v33 = vpop.eup %2382  ;;  %1172 = vmax.xlane.f32.xlu1 %v1171_v32  ;;  %v1184_v39 = vsel %vm982_vm6, %v2880_v37, inf  ;;  %v1168_v44 = vsel %vm982_vm6, %v2880_v37, -inf  ;;  %v1230_v32 = vld [vmem:[%s3138_s4 + $0x38] sm:$0xff] }
 0x30d   : > { %v2875_v34 = vadd.f32 -0.63095737, %v2383_v33  ;;  %v2385_v38 = vpop.eup %2384  ;;  %v1375_v33 = vld [vmem:[#allocation2] sm:$0xff] }
 0x30e   : > { %v2885_v41 = vadd.f32 -0.63095737, %v2385_v38  ;;  %v2387_v42 = vpop.eup %2386  ;;  %2214 = vmatprep.subr.mxu1 %v1375_v33 }
 0x30f   : > { %v1175_v36 = vsel %vm1174_vm1, %v2875_v34, -inf  ;;  %v1190_v40 = vsel %vm1174_vm1, %v2875_v34, inf  ;;  %v2891_v45 = vadd.f32 -0.63095737, %v2387_v42  ;;  %2215 = vmatpush3.msra.mxu1 %v1375_v33  ;;  %v1944_v42 = vld [vmem:[%s3140_s6 + $0x78] sm:$0xff] }
 0x310   : > { %1188 = vmin.xlane.f32.xlu1 %v1187_v35  ;;  %1176 = vmax.xlane.f32.xlu0 %v1175_v36  ;;  %v1181_v43 = vsel %vm982_vm6, %v2885_v41, inf  ;;  %v1165_v47 = vsel %vm982_vm6, %v2885_v41, -inf }
 0x311   : > { %v1178_v46 = vsel %vm982_vm6, %v2891_v45, inf  ;;  %v1162_v48 = vsel %vm982_vm6, %v2891_v45, -inf  ;;  %2247 = vmatprep.subr.mxu1 %v2523_v0 }
 0x314   : > { %1185 = vmin.xlane.f32.xlu1 %v1184_v39  ;;  %1191 = vmin.xlane.f32.xlu0 %v1190_v40 }
 0x318   : > { %1182 = vmin.xlane.f32.xlu1 %v1181_v43  ;;  %1169 = vmax.xlane.f32.xlu0 %v1168_v44  ;;  %v1572_v43 = vld [vmem:[%s3140_s6 + $0x38] sm:$0xff]  ;;  %v1943_v44 = vld [vmem:[%s3140_s6 + $0x70] sm:$0xff] }
 0x31c   : > { %1179 = vmin.xlane.f32.xlu1 %v1178_v46  ;;  %1166 = vmax.xlane.f32.xlu0 %v1165_v47  ;;  %v1942_v46 = vld [vmem:[%s3140_s6 + $0x68] sm:$0xff] }
 0x31d   : > { %v1570_v47 = vld [vmem:[%s3140_s6 + $0x28] sm:$0xff] }
 0x320   : > { %1163 = vmax.xlane.f32.xlu0 %v1162_v48  ;;  %v1941_v48 = vld [vmem:[%s3140_s6 + $0x60] sm:$0xff] }
 0x395   : > { %v1173_v54 = vpop.xlane.xlu1 %1172 }
 0x399   : > { %v1189_v55 = vpop.xlane.xlu1 %1188  ;;  %v1177_v56 = vpop.xlane.xlu0 %1176 }
 0x39a   : > { %v1201_v57 = vsub.f32 %v1173_v54, %v1189_v55  ;;  %v1196_v9 = vsub.f32 %v2871_v30, %v1189_v55  ;;  %v1228_v30 = vld [vmem:[%s3138_s4 + $0x28] sm:$0xff] }
 0x39b   : > { %v1938_v54 = vld [vmem:[%s3140_s6 + $0x48] sm:$0xff] }
 0x39c   : > { %2388 = vrcp.f32 %v1201_v57  ;;  %v1566_v55 = vld [vmem:[%s3140_s6 + $0x8] sm:$0xff]  ;;  %v1565_v57 = vld [vmem:[%s3140_s6] sm:$0xff] }
 0x39d   : > { %v1186_v58 = vpop.xlane.xlu1 %1185  ;;  %v1192_v59 = vpop.xlane.xlu0 %1191 }
 0x39e   : > { %v1202_v61 = vsub.f32 %v1177_v56, %v1192_v59  ;;  %v1197_v2 = vsub.f32 %v2875_v34, %v1192_v59  ;;  %v1195_v14 = vsub.f32 %v2880_v37, %v1186_v58  ;;  %v1937_v56 = vld [vmem:[%s3140_s6 + $0x40] sm:$0xff] }
 0x3a0   : > { %2390 = vrcp.f32 %v1202_v61 }
 0x3a1   : > { %v1170_v62 = vpop.xlane.xlu0 %1169  ;;  %v1183_v1 = vpop.xlane.xlu1 %1182 }
 0x3a2   : > { %v1200_v63 = vsub.f32 %v1170_v62, %v1186_v58  ;;  %v1194_v12 = vsub.f32 %v2885_v41, %v1183_v1 }
 0x3a4   : > { %2392 = vrcp.f32 %v1200_v63 }
 0x3a5   : > { %v1167_v3 = vpop.xlane.xlu0 %1166  ;;  %v1180_v6 = vpop.xlane.xlu1 %1179 }
 0x3a6   : > { %v1199_v4 = vsub.f32 %v1167_v3, %v1183_v1  ;;  %v1193_v22 = vsub.f32 %v2891_v45, %v1180_v6  ;;  %v1571_v45 = vld [vmem:[%s3140_s6 + $0x30] sm:$0xff] }
 0x3a8   : > { %2394 = vrcp.f32 %v1199_v4 }
 0x3a9   : > { %v2389_v5 = vpop.eup %2388  ;;  %v1164_v8 = vpop.xlane.xlu0 %1163 }
 0x3aa   : > { %v1198_v10 = vsub.f32 %v1164_v8, %v1180_v6  ;;  %v1211_v11 = vmul.f32 %v2389_v5, %v1196_v9 }
 0x3ac   : > { %2396 = vrcp.f32 %v1198_v10  ;;  %vm1216_vm3 = vcmp.ne.f32.partialorder %v1211_v11, %v1211_v11 }
 0x3ad   : > { %v2391_v7 = vpop.eup %2390  ;;  %v1221_v18 = vsel %vm1216_vm3, 0.0, %v1211_v11 }
 0x3ae   : > { %v1212_v13 = vmul.f32 %v2391_v7, %v1197_v2 }
 0x3b0   : > { %vm1217_vm2 = vcmp.ne.f32.partialorder %v1212_v13, %v1212_v13 }
 0x3b1   : > { %v2393_v15 = vpop.eup %2392  ;;  %v1222_v17 = vsel %vm1217_vm2, 0.0, %v1212_v13 }
 0x3b2   : > { %2184 = vmatprep.subr.msk.mxu0 %vm982_vm6, %v1222_v17  ;;  %v1210_v60 = vmul.f32 %v2393_v15, %v1195_v14 }
 0x3b3   : > { %2185 = vmatpush3.xpose.msk.msra.mxu0 %vm982_vm6, %v1222_v17 }
 0x3b4   : > { %2186 = vmatprep.subr.msk.mxu0 %vm982_vm6, %v1221_v18  ;;  %vm1215_vm4 = vcmp.ne.f32.partialorder %v1210_v60, %v1210_v60 }
 0x3b5   : > { %v2395_v19 = vpop.eup %2394  ;;  %v1220_v21 = vsel %vm1215_vm4, 0.0, %v1210_v60 }
 0x3b6   : > { %v1209_v20 = vmul.f32 %v2395_v19, %v1194_v12 }
 0x3b7   : > { %2187 = vmatpush3.xpose.msk.msra.mxu0 %vm982_vm6, %v1221_v18 }
 0x3b8   : > { %2188 = vmatprep.subr.msk.mxu0 %vm982_vm6, %v1220_v21  ;;  %vm1214_vm5 = vcmp.ne.f32.partialorder %v1209_v20, %v1209_v20 }
 0x3b9   : > { %v2397_v23 = vpop.eup %2396  ;;  %v1219_v16 = vsel %vm1214_vm5, 0.0, %v1209_v20 }
 0x3ba   : > { %v1208_v24 = vmul.f32 %v2397_v23, %v1193_v22 }
 0x3bb   : > { %2189 = vmatpush3.xpose.msk.msra.mxu0 %vm982_vm6, %v1220_v21 }
 0x3bc   : > { %2190 = vmatprep.subr.msk.mxu0 %vm982_vm6, %v1219_v16  ;;  %vm1213_vm7 = vcmp.ne.f32.partialorder %v1208_v24, %v1208_v24 }
 0x3bd   : > { %v1218_v25 = vsel %vm1213_vm7, 0.0, %v1208_v24 }
 0x3bf   : > { %2191 = vmatpush3.xpose.msk.msra.mxu0 %vm982_vm6, %v1219_v16 }
 0x3c0   : > { %2192 = vmatprep.subr.msk.mxu0 %vm982_vm6, %v1218_v25 }
 0x3c3   : > { %2193 = vmatpush3.xpose.msk.msra.mxu0 %vm982_vm6, %v1218_v25 }
 0x3c4   : > { %2228 = vmatprep.subr.mxu0 %v2523_v0 }
 0x3c6   : > { %2195 = vmatmul.mubr.msk.f32.vlgmr.msra.gmra.mxu0 %vm982_vm6, %v1224_v26 }
 0x3c7   : > { %2197 = vmatprep.mubr.msk.f32.mxu0 %vm982_vm6, %v1225_v27  ;;  %2229 = vmatpush3.msra.mxu0 %v1944_v42 }
 0x3c8   : > { %2230 = vmatprep.subr.mxu0 %v2523_v0 }
 0x3c9   : > { %2231 = vmatpush3.msra.mxu0 %v1943_v44 }
 0x3ca   : > { %2198 = vmatmul.mubr.msk.f32.gmra.mxu0 %vm982_vm6, %v1226_v28  ;;  %2232 = vmatprep.subr.mxu0 %v2523_v0 }
 0x3cb   : > { %2200 = vmatprep.mubr.msk.f32.mxu0 %vm982_vm6, %v1227_v29  ;;  %2233 = vmatpush3.msra.mxu0 %v1942_v46 }
 0x3cc   : > { %2234 = vmatprep.subr.mxu0 %v2523_v0 }
 0x3cd   : > { %2235 = vmatpush3.msra.mxu0 %v1941_v48 }
 0x3ce   : > { %2201 = vmatmul.mubr.msk.f32.gmra.mxu0 %vm982_vm6, %v1228_v30  ;;  %2236 = vmatprep.subr.mxu0 %v2523_v0 }
 0x3cf   : > { %2203 = vmatprep.mubr.msk.f32.mxu0 %vm982_vm6, %v1229_v31  ;;  %2237 = vmatpush3.msra.mxu0 %v1940_v50 }
 0x3d0   : > { %2238 = vmatprep.subr.mxu0 %v2523_v0 }
 0x3d1   : > { %2239 = vmatpush3.msra.mxu0 %v1939_v52 }
 0x3d2   : > { %2204 = vmatmul.mubr.msk.f32.gmra.mxu0 %vm982_vm6, %v1230_v32  ;;  %2240 = vmatprep.subr.mxu0 %v2523_v0 }
 0x3d3   : > { %2244 = vmatprep.mubr.msk.f32.mxu0 %vm2524_vm0, %v2523_v0  ;;  %2241 = vmatpush3.msra.mxu0 %v1938_v54 }
 0x3d4   : > { %2242 = vmatprep.subr.mxu0 %v2523_v0 }
 0x3d5   : > { %2243 = vmatpush3.msra.mxu0 %v1937_v56 }
 0x486   : > { %v2196_v34 = vpop.f32.mrf.mxu0 }
 0x488   : > { %v1336_v35 = vpop.f32.mrf.mxu0 }
 0x489   : > { %2216 = vmatprep.mubr.msk.f32.mxu1 %vm982_vm6, %v1336_v35 }
 0x48a   : > { %v2199_v36 = vpop.f32.mrf.mxu0  ;;  %2217 = vmatmul.mubr.msk.f32.vlgmr.msra.gmra.mxu1 %vm982_vm6, %v2196_v34 }
 0x48b   : > { %2248 = vmatpush3.msra.mxu1 %v1572_v43 }
 0x48c   : > { %v1346_v37 = vpop.f32.mrf.mxu0  ;;  %2249 = vmatprep.subr.mxu1 %v2523_v0 }
 0x48d   : > { %2219 = vmatprep.mubr.msk.f32.mxu1 %vm982_vm6, %v1346_v37  ;;  %2250 = vmatpush3.msra.mxu1 %v1571_v45 }
 0x48e   : > { %v2202_v38 = vpop.f32.mrf.mxu0  ;;  %2220 = vmatmul.mubr.msk.f32.gmra.mxu1 %vm982_vm6, %v2199_v36  ;;  %2251 = vmatprep.subr.mxu1 %v2523_v0 }
 0x48f   : > { %2252 = vmatpush3.msra.mxu1 %v1570_v47 }
 0x490   : > { %v1356_v39 = vpop.f32.mrf.mxu0  ;;  %2253 = vmatprep.subr.mxu1 %v2523_v0 }
 0x491   : > { %2222 = vmatprep.mubr.msk.f32.mxu1 %vm982_vm6, %v1356_v39  ;;  %2254 = vmatpush3.msra.mxu1 %v1569_v49 }
 0x492   : > { %v2205_v40 = vpop.f32.mrf.mxu0  ;;  %2223 = vmatmul.mubr.msk.f32.gmra.mxu1 %vm982_vm6, %v2202_v38  ;;  %2255 = vmatprep.subr.mxu1 %v2523_v0 }
 0x493   : > { %2256 = vmatpush3.msra.mxu1 %v1568_v51 }
 0x494   : > { %v1366_v41 = vpop.f32.mrf.mxu0  ;;  %2257 = vmatprep.subr.mxu1 %v2523_v0 }
 0x495   : > { %2225 = vmatprep.mubr.msk.f32.mxu1 %vm982_vm6, %v1366_v41  ;;  %2258 = vmatpush3.msra.mxu1 %v1567_v53 }
 0x496   : > { %2226 = vmatmul.mubr.msk.f32.gmra.mxu1 %vm982_vm6, %v2205_v40  ;;  %2259 = vmatprep.subr.mxu1 %v2523_v0 }
 0x497   : > { %2263 = vmatprep.mubr.msk.f32.mxu1 %vm2524_vm0, %v2523_v0  ;;  %2260 = vmatpush3.msra.mxu1 %v1566_v55  ;;  %vm1512_vm0 = vcmask 523264  }
 0x498   : > { %2261 = vmatprep.subr.mxu1 %v2523_v0 }
 0x499   : > { %2262 = vmatpush3.msra.mxu1 %v1565_v57 }
 0x54a   : > { %v2218_v58 = vpop.f32.mrf.mxu1 }
 0x54b   : > { %1514 = vst.msk [vmem:[%s3028_s17 + $0x8] sm:$0xff] %vm1512_vm0, %v2218_v58  ;;  %v1522_v62 = vsel %vm1512_vm0, %v2218_v58, 0.0  ;;  %v1545_v60 = vsel %vm1512_vm0, %v2218_v58, -inf }
 0x54c   : > { %v1473_v59 = vpop.f32.mrf.mxu1 }
 0x54d   : > { %1513 = vst.msk [vmem:[%s3028_s17] sm:$0xff] %vm1512_vm0, %v1473_v59  ;;  %v1521_v0 = vsel %vm1512_vm0, %v1473_v59, 0.0  ;;  %v1544_v13 = vsel %vm1512_vm0, %v1473_v59, -inf }
 0x54e   : > { %v2221_v61 = vpop.f32.mrf.mxu1  ;;  %v1523_v63 = vadd.f32 %v1522_v62, %v1521_v0 }
 0x54f   : > { %1516 = vst.msk [vmem:[%s3028_s17 + $0x18] sm:$0xff] %vm1512_vm0, %v2221_v61  ;;  %v1526_v6 = vsel %vm1512_vm0, %v2221_v61, 0.0  ;;  %v1547_v20 = vsel %vm1512_vm0, %v2221_v61, -inf }
 0x550   : > { %v1483_v1 = vpop.f32.mrf.mxu1 }
 0x551   : > { %1515 = vst.msk [vmem:[%s3028_s17 + $0x10] sm:$0xff] %vm1512_vm0, %v1483_v1  ;;  %v1524_v3 = vsel %vm1512_vm0, %v1483_v1, 0.0  ;;  %v1546_v21 = vsel %vm1512_vm0, %v1483_v1, -inf }
 0x552   : > { %v1525_v4 = vadd.f32 %v1524_v3, %v1523_v63  ;;  %v2224_v5 = vpop.f32.mrf.mxu1 }
 0x553   : > { %1518 = vst.msk [vmem:[%s3028_s17 + $0x28] sm:$0xff] %vm1512_vm0, %v2224_v5  ;;  %v1530_v14 = vsel %vm1512_vm0, %v2224_v5, 0.0  ;;  %v1550_v15 = vsel %vm1512_vm0, %v2224_v5, -inf }
 0x554   : > { %v1493_v8 = vpop.f32.mrf.mxu1  ;;  %v1527_v9 = vadd.f32 %v1526_v6, %v1525_v4  ;;  %v1551_v24 = vmax.f32 %v1545_v60, %v1550_v15 }
 0x555   : > { %1517 = vst.msk [vmem:[%s3028_s17 + $0x20] sm:$0xff] %vm1512_vm0, %v1493_v8  ;;  %v1528_v10 = vsel %vm1512_vm0, %v1493_v8, 0.0  ;;  %v1548_v11 = vsel %vm1512_vm0, %v1493_v8, -inf }
 0x556   : > { %v1529_v2 = vadd.f32 %v1528_v10, %v1527_v9  ;;  %v2227_v7 = vpop.f32.mrf.mxu1  ;;  %v1549_v18 = vmax.f32 %v1544_v13, %v1548_v11 }
 0x557   : > { %1520 = vst.msk [vmem:[%s3028_s17 + $0x38] sm:$0xff] %vm1512_vm0, %v2227_v7  ;;  %v1554_v17 = vsel %vm1512_vm0, %v2227_v7, -inf  ;;  %v1534_v27 = vsel %vm1512_vm0, %v2227_v7, 0.0 }
 0x558   : > { %v1503_v12 = vpop.f32.mrf.mxu1  ;;  %v1531_v19 = vadd.f32 %v1530_v14, %v1529_v2  ;;  %v1555_v16 = vmax.f32 %v1547_v20, %v1554_v17  ;;  %v1556_v28 = vmax.f32 %v1549_v18, %v1551_v24 }
 0x559   : > { %1519 = vst.msk [vmem:[%s3028_s17 + $0x30] sm:$0xff] %vm1512_vm0, %v1503_v12  ;;  %v1532_v22 = vsel %vm1512_vm0, %v1503_v12, 0.0  ;;  %v1552_v23 = vsel %vm1512_vm0, %v1503_v12, -inf }
 0x55a   : > { %v1533_v25 = vadd.f32 %v1532_v22, %v1531_v19  ;;  %v1553_v26 = vmax.f32 %v1546_v21, %v1552_v23 }
 0x55c   : > { %v1535_v29 = vadd.f32 %v1534_v27, %v1533_v25  ;;  %v1557_v30 = vmax.f32 %v1553_v26, %v1555_v16 }
 0x55e   : > { %v1536_v31 = vrot.slane %v1535_v29, 4  ;;  %v1558_v32 = vmax.f32 %v1556_v28, %v1557_v30 }
 0x560   : > { %v1537_v33 = vadd.f32 %v1536_v31, %v1535_v29  ;;  %v1559_v34 = vrot.slane %v1558_v32, 4 }
 0x562   : > { %v1538_v35 = vrot.slane %v1537_v33, 2  ;;  %v1560_v36 = vmax.f32 %v1558_v32, %v1559_v34 }
 0x564   : > { %v1539_v37 = vadd.f32 %v1538_v35, %v1537_v33  ;;  %v1561_v38 = vrot.slane %v1560_v36, 2 }
 0x566   : > { %v1540_v39 = vrot.slane %v1539_v37, 1  ;;  %v1562_v40 = vmax.f32 %v1560_v36, %v1561_v38 }
 0x568   : > { %v1541_v41 = vadd.f32 %v1540_v39, %v1539_v37  ;;  %v1563_v42 = vrot.slane %v1562_v40, 1 }
 0x56a   : > { %v1543_v43 = vmul.f32 0.015625, %v1541_v41  ;;  %v1564_v44 = vmax.f32 %v1562_v40, %v1563_v42 }
 0x56c   : > { %2245 = vmatmul.mubr.msk.f32.vlgmr.msra.gmra.mxu0 %vm1512_vm0, %v1564_v44  ;;  %2264 = vmatmul.mubr.msk.f32.vlgmr.msra.gmra.mxu1 %vm1512_vm0, %v1543_v43 }
 0x56d   : > { %2437 = shalt.err (!%p2434_p0)
}
 0x56e   : > { %s2438_s17 = scalar_lea.hbm %s3071_s26, 1024  ;;  %s2442_s25 = scalar_lea.hbm %s3143_s9, 2048 }
 0x56f   : > { %p2439_p1 = scmp.ne.s32.totalorder %s3071_s26, %s2438_s17  ;;  %p2443_p4 = scmp.lt.s32.totalorder %s3071_s26, %s3143_s9 }
 0x570   : > { %p2444_p7 = scmp.lt.s32.totalorder %s2442_s25, %s2438_s17 }
 0x571   : > { %p2440_p2 = pnand %p2439_p1, %p2617_p5 }
 0x572   : > { %p2445_p8 = por %p2444_p7, %p2443_p4 }
 0x573   : > { %p2441_p3 = pneg %p2440_p2 }
 0x575   : > { %p2446_p6 = pnand %p2445_p8, %p2441_p3 }
 0x577   : > { %2449 = shalt.err (!%p2446_p6)
}
 0x578   : > { %s2526_s28 = smov 128   ;;  %s2527_s14 = smov 8   ;;  %v1728_v47 = vld [vmem:[%s3141_s7] sm:$0x1] }
 0x579   : > { %s3151_s16 = scalar_lea.sflag [#allocation7], %s3025_s21  ;;  %s1948_s23 = sshll.u32 %s2600_s13, 4 }
 0x57a   : > { %2272 = dma.vmem_to_hbm [thread:$0]  (%p2617_p5), %s3065_s22, 1024, %s3071_s26, %s3151_s16, %s2526_s28, %s2526_s28, %s2527_s14  }
 0x57b   : > { %s343_s24 = scalar_lea.vmem [#allocation5], %s3025_s21  ;;  %s1747_s1 = scalar_lea.hbm %s3142_s8, %s1948_s23 }
 0x57c   : > { %s1749_s25 = sshll.u32 %s343_s24, 4  ;;  %s1732_s22 = scalar_lea.sflag [#allocation4], %s3025_s21  ;;  %s1750_s25 = int_to_ptr.vmem [resolvable:$true] %s1749_s25 }
 0x57d   : > { %s2450_s26 = scalar_lea.vmem %s1750_s25, 16  ;;  %s2528_s28 = smov [#allocation5]  }
 0x57e   : > { %p2451_p9 = scmp.ne.s32.totalorder %s1750_s25, %s2450_s26  ;;  %s2454_s13 = sshll.u32 %s2528_s28, 4  ;;  %s2455_s13 = int_to_ptr.vmem [resolvable:$false] %s2454_s13 }
 0x57f   : > { %s2456_s14 = scalar_lea.vmem %s2455_s13, 32  ;;  %p2457_p12 = scmp.lt.s32.totalorder %s1750_s25, %s2455_s13 }
 0x580   : > { %p2452_p10 = pnand %p2451_p9, %p2617_p5  ;;  %p2458_p13 = scmp.lt.s32.totalorder %s2456_s14, %s2450_s26 }
 0x582   : > { %p2453_p11 = pneg %p2452_p10  ;;  %p2459_p0 = por %p2458_p13, %p2457_p12 }
 0x584   : > { %p2460_p1 = pnand %p2459_p0, %p2453_p11 }
 0x62c   : > { %v1651_v45 = vpop.f32.mrf.mxu0  ;;  %v1724_v46 = vpop.f32.mrf.mxu1 }
 0x62d   : > { %v1725_v48 = vadd.f32 %v1724_v46, %v1651_v45 }
 0x62e   : > { %v2246_v49 = vpop.f32.mrf.mxu0  ;;  %v2265_v50 = vpop.f32.mrf.mxu1 }
 0x62f   : > { %v1729_v51 = vadd.f32 %v1728_v47, %v1725_v48 }
 0x631   : > { %1730 = vst [vmem:[%s343_s24] sm:$0x1] %v1729_v51 }
 0x632   : > { %2463 = shalt.err (!%p2460_p1)
}
 0x633   : > { %s2464_s16 = scalar_lea.hbm %s1747_s1, 16  ;;  %s2468_s27 = scalar_lea.hbm %s3142_s8, 32 }
 0x634   : > { %p2465_p2 = scmp.ne.s32.totalorder %s1747_s1, %s2464_s16  ;;  %p2469_p7 = scmp.lt.s32.totalorder %s1747_s1, %s3142_s8 }
 0x635   : > { %p2470_p8 = scmp.lt.s32.totalorder %s2468_s27, %s2464_s16 }
 0x636   : > { %p2466_p3 = pnand %p2465_p2, %p2617_p5 }
 0x637   : > { %p2471_p6 = por %p2470_p8, %p2469_p7 }
 0x638   : > { %p2467_p4 = pneg %p2466_p3 }
 0x63a   : > { %p2472_p9 = pnand %p2471_p6, %p2467_p4 }
 0x63c   : > { %2475 = shalt.err (!%p2472_p9)
}
 0x63d   : > { %2271 = dma.vmem_to_hbm [thread:$0]  (%p2617_p5), %s1750_s25, 16, %s1747_s1, %s1732_s22  }
 0x63e PF: > { %p2288_p10 = scmp.ge.s32.totalorder %s2518_s12, 2  ;;  %s1777_s24 = sand.u32 1, %s2506_s30  }
 0x63f   : > { %p3152_p11 = scmp.ne.s32.totalorder %s3147_s20, 0  ;;  %s1778_s29 = scalar_lea.sflag [#allocation4], %s1777_s24 }
 0x641   : > { %p2280_p12 = pnand %p2288_p10, %p3152_p11 }
 0x643   : > { %p2281_p13 = pneg %p2280_p12 }
 0x645   : > { %2497 = dma.done.wait (%p2281_p13), %s1778_s29, 16  }
 0x646   : > { %2499 = vsyncadd (%p2281_p13), %s1778_s29, 4294967280  ;;  %s1786_s26 = scalar_lea.sflag [#allocation7], %s1777_s24 }
 0x647   : > { %2501 = dma.done.wait (%p2281_p13), %s1786_s26, 1024  }
 0x648   : > { %2503 = vsyncadd (%p2281_p13), %s1786_s26, 4294966272  ;;  %p24_p5 = scmp.ge.s32.totalorder %s2604_s15, 4   ;;  %s3153_s30 = smov %s2510_s10 }
 0x649   : > { %s3154_s10 = smov %s2514_s11  ;;  %s3155_s11 = smov %s2615_s18 }
 0x64a   : > { %s3156_s12 = smov %s2604_s15  ;;  %26 = sbr.rel (!%p24_p5) target bundleno = 9 (0x9), region = 113 }
 0x64f   :  { %1791 = vsyncpa [#allocation3], 1 }
 0x650   :  { %1793 = vsyncpa [#allocation3 + $0x1], 1 }
 0x651   :  { %1794 = vsyncpa [#allocation4], 1 }
 0x652   :  { %1796 = vsyncpa [#allocation4 + $0x1], 1 }
 0x653   :  { %1797 = vsyncpa [#allocation7], 1 }
 0x654   :  { %1799 = vsyncpa [#allocation7 + $0x1], 1 }

</bundles_post_ra>
